<compile_context>
chip_gen: v7x
topology: tpu7x:2x2x1
jax: 0.10.0
libtpu: 0.0.40
codegen_flags: <defaults>
</compile_context>

<pallas_src>
import functools

import jax
import jax.numpy as jnp
import numpy as np
from jax.experimental import pallas as pl
from jax.experimental.pallas import tpu as pltpu

# Keep the pure-JAX reference matmuls at full f32 precision so the correctness
# check is apples-to-apples with the in-kernel f32 MXU matmuls.
jax.config.update("jax_default_matmul_precision", "highest")

_LANE = 128
_BLOCK_ROWS = 256          # row-tile size (multiple of 8); shrink for v7x VMEM


def _round_up(x, m):
    return ((x + m - 1) // m) * m


def _pad2(a, rows, cols):
    return jnp.pad(a, ((0, rows - a.shape[0]), (0, cols - a.shape[1])))


def _compiler_params():
    return pltpu.CompilerParams(
        dimension_semantics=("parallel",),       # shard row tiles across TCs
        vmem_limit_bytes=64 * 1024 * 1024,
    )


# ---------------------------------------------------------------------------
# Pallas kernels
# ---------------------------------------------------------------------------
def _gat_linear_kernel(x_ref, w_ref, a_ref, h_ref, att_ref):
    """h = x @ W ; att = h @ [a_self | a_neigh | 0 ...] (fused, lane-padded)."""
    h = jnp.dot(x_ref[...], w_ref[...], preferred_element_type=jnp.float32)
    h_ref[...] = h
    att_ref[...] = jnp.dot(h, a_ref[...], preferred_element_type=jnp.float32)


def _gat_attn_kernel(attn_self_ref, attn_neigh_ref, adj_ref, m_ref, h_ref,
                     out_ref, *, alpha, normalize):
    """One (TM, N) row tile of the graph attention layer.

    Softmax is row-wise (dim=1), so a row tile is self-contained.
    """
    # (TM, 1) + (1, N) -> (TM, N) logits, scaled by M then LeakyReLU(alpha).
    dense = (attn_self_ref[...] + attn_neigh_ref[...]) * m_ref[...]
    dense = jnp.where(dense > 0, dense, alpha * dense)

    adj = adj_ref[...].astype(jnp.float32)        # bf16 stream, f32 math
    logits = jnp.where(adj > 0, dense, -9e15)

    # numerically stable row-wise softmax (matches F.softmax(dim=1))
    logits = logits - jnp.max(logits, axis=1, keepdims=True)
    e = jnp.exp(logits)
    attention = e * pl.reciprocal(jnp.sum(e, axis=1, keepdims=True), approx=False)

    h_prime = jnp.dot(attention, h_ref[...], preferred_element_type=jnp.float32)
    # ELU; clamp the exp argument so padded/garbage lanes never produce inf.
    out = jnp.where(h_prime > 0, h_prime,
                    jnp.exp(jnp.minimum(h_prime, 0.0)) - 1.0)

    if normalize:                                  # fused F.normalize(p=2, dim=1)
        nrm = jnp.sqrt(jnp.sum(out * out, axis=1, keepdims=True))
        out = out / jnp.maximum(nrm, 1e-12)
    out_ref[...] = out


def _decode_kernel(z_ref, zt_ref, a_ref):
    """Row tile of A_pred = sigmoid(z @ z.T); z.T is laid out once in the wrapper."""
    logits = jnp.dot(z_ref[...], zt_ref[...], preferred_element_type=jnp.float32)
    a_ref[...] = 1.0 / (1.0 + jnp.exp(-logits))


# ---------------------------------------------------------------------------
# Python wrappers around pallas_call
# ---------------------------------------------------------------------------
def gat_layer(x_p, adj_p, m_p, w_p, a_pair_p, *, alpha, tm, normalize):
    n_pad, f_in_pad = x_p.shape
    f_out_pad = w_p.shape[1]
    a_cols = a_pair_p.shape[1]                     # 128 (lane-dense att store)
    grid = (n_pad // tm,)
    cp = _compiler_params()

    # 1) linear part: h = x @ W and the fused attention projection.
    h_p, att = pl.pallas_call(
        _gat_linear_kernel,
        grid=grid,
        in_specs=[
            pl.BlockSpec((tm, f_in_pad), lambda i: (i, 0)),
            pl.BlockSpec((f_in_pad, f_out_pad), lambda i: (0, 0)),   # resident
            pl.BlockSpec((f_out_pad, a_cols), lambda i: (0, 0)),     # resident
        ],
        out_specs=(
            pl.BlockSpec((tm, f_out_pad), lambda i: (i, 0)),         # lane dense
            pl.BlockSpec((tm, a_cols), lambda i: (i, 0)),            # lane dense
        ),
        out_shape=(
            jax.ShapeDtypeStruct((n_pad, f_out_pad), jnp.float32),
            jax.ShapeDtypeStruct((n_pad, a_cols), jnp.float32),
        ),
        compiler_params=cp,
    )(x_p, w_p, a_pair_p)

    attn_self = att[:, 0:1]                            # (n_pad, 1)
    attn_neigh_row = att[:, 1:2].reshape(1, n_pad)     # lane-oriented, once/layer

    # 2) attention part: row-tiled masked softmax + attention @ h (+ ELU / norm).
    kernel = functools.partial(_gat_attn_kernel, alpha=alpha, normalize=normalize)
    return pl.pallas_call(
        kernel,
        grid=grid,
        in_specs=[
            pl.BlockSpec((tm, 1), lambda i: (i, 0)),
            pl.BlockSpec((1, n_pad), lambda i: (0, 0)),              # resident
            pl.BlockSpec((tm, n_pad), lambda i: (i, 0)),             # adj (bf16)
            pl.BlockSpec((tm, n_pad), lambda i: (i, 0)),             # M (f32)
            pl.BlockSpec((n_pad, f_out_pad), lambda i: (0, 0)),      # full h, resident
        ],
        out_specs=pl.BlockSpec((tm, f_out_pad), lambda i: (i, 0)),
        out_shape=jax.ShapeDtypeStruct((n_pad, f_out_pad), jnp.float32),
        compiler_params=cp,
    )(attn_self, attn_neigh_row, adj_p, m_p, h_p)


def decode(z_p, *, tm):
    n_pad, e_pad = z_p.shape
    zt_p = z_p.T                                       # layout plumbing, once
    grid = (n_pad // tm,)
    return pl.pallas_call(
        _decode_kernel,
        grid=grid,
        in_specs=[
            pl.BlockSpec((tm, e_pad), lambda i: (i, 0)),
            pl.BlockSpec((e_pad, n_pad), lambda i: (0, 0)),          # resident
        ],
        out_specs=pl.BlockSpec((tm, n_pad), lambda i: (i, 0)),       # lane dense
        out_shape=jax.ShapeDtypeStruct((n_pad, n_pad), jnp.float32),
        compiler_params=_compiler_params(),
    )(z_p, zt_p)


def gae_forward(x, adj, M, params, alpha, block_rows=_BLOCK_ROWS):
    n, f_in = x.shape
    n_pad = _round_up(max(n, 8), _LANE)
    tm = min(block_rows, n_pad)
    n_pad = _round_up(n_pad, tm)

    x_p = _pad2(x.astype(jnp.float32), n_pad, _round_up(f_in, _LANE))
    adj_p = _pad2(adj.astype(jnp.bfloat16), n_pad, n_pad)   # exact for a 0/1 mask
    m_p = _pad2(M.astype(jnp.float32), n_pad, n_pad)

    n_layers = len(params)
    h_p = x_p
    for idx in range(1, n_layers + 1):
        W, a_self, a_neigh = params[f"conv{idx}"]
        f_out_pad = _round_up(W.shape[1], _LANE)
        w_p = _pad2(W.astype(jnp.float32), h_p.shape[1], f_out_pad)
        # [a_self | a_neigh] padded to a full 128-lane slab -> unmasked vst.
        a_pair_p = _pad2(
            jnp.concatenate([a_self, a_neigh], axis=1).astype(jnp.float32),
            f_out_pad, _LANE)
        h_p = gat_layer(h_p, adj_p, m_p, w_p, a_pair_p, alpha=alpha, tm=tm,
                        normalize=(idx == n_layers))      # last layer writes z

    a_pred_p = decode(h_p, tm=tm)
    embedding = params[f"conv{n_layers}"][0].shape[1]
    return a_pred_p[:n, :n], h_p[:n, :embedding]


# ---------------------------------------------------------------------------
# Pure-JAX reference (for correctness check only)
# ---------------------------------------------------------------------------
def _gat_layer_ref(x, adj, M, W, a_self, a_neigh, alpha):
    h = x @ W
    dense = (h @ a_self) + (h @ a_neigh).T
    dense = dense * M
    dense = jnp.where(dense > 0, dense, alpha * dense)
    logits = jnp.where(adj > 0, dense, jnp.full_like(dense, -9e15))
    attention = jax.nn.softmax(logits, axis=1)
    hp = attention @ h
    return jnp.where(hp > 0, hp, jnp.exp(hp) - 1.0)


def _gae_ref(x, adj, M, params, alpha):
    h = _gat_layer_ref(x, adj, M, *params["conv1"], alpha)
    h = _gat_layer_ref(h, adj, M, *params["conv2"], alpha)
    h = _gat_layer_ref(h, adj, M, *params["conv3"], alpha)
    norm = jnp.sqrt(jnp.sum(h * h, axis=1, keepdims=True))
    z = h / jnp.maximum(norm, 1e-12)
    A_pred = 1.0 / (1.0 + jnp.exp(-(z @ z.T)))
    return A_pred, z


# ---------------------------------------------------------------------------
# Deterministic parameter init (xavier_uniform, gain=1.414 as in the module)
# ---------------------------------------------------------------------------
def _xavier_uniform(key, shape, gain=1.414):
    fan_in, fan_out = shape[0], shape[1]
    bound = gain * np.sqrt(6.0 / (fan_in + fan_out))
    return jax.random.uniform(key, shape, jnp.float32, -bound, bound)


def init_gae_params(key, num_features, hidden1, hidden2, embedding):
    dims = [(num_features, hidden1), (hidden1, hidden2), (hidden2, embedding)]
    params = {}
    for idx, (f_in, f_out) in enumerate(dims, start=1):
        key, kw, ks, kn = jax.random.split(key, 4)
        params[f"conv{idx}"] = (
            _xavier_uniform(kw, (f_in, f_out)),
            _xavier_uniform(ks, (f_out, 1)),
            _xavier_uniform(kn, (f_out, 1)),
        )
    return params


# ---------------------------------------------------------------------------
if __name__ == "__main__":
    N = 500              # deliberately not a multiple of the 256-row tile
    NUM_FEATURES = 48    # deliberately not lane (128) aligned -> exercises padding
    HIDDEN1 = 64
    HIDDEN2 = 32
    EMBEDDING = 16
    ALPHA = 0.2

    root = jax.random.PRNGKey(0)
    k_x, k_adj, k_m, k_params = jax.random.split(root, 4)

    x = jax.random.normal(k_x, (N, NUM_FEATURES), jnp.float32)

    # random symmetric adjacency with self loops
    a = (jax.random.uniform(k_adj, (N, N)) > 0.9).astype(jnp.float32)
    adj = jnp.clip(a + a.T + jnp.eye(N, dtype=jnp.float32), 0.0, 1.0)

    # proximity matrix M (positive floats, as produced by DAEGC's get_M)
    M = jax.random.uniform(k_m, (N, N), jnp.float32, 0.1, 1.0)

    params = init_gae_params(k_params, NUM_FEATURES, HIDDEN1, HIDDEN2, EMBEDDING)

    A_pred, z = gae_forward(x, adj, M, params, ALPHA)
    jax.block_until_ready((A_pred, z))

    A_ref, z_ref = _gae_ref(x, adj, M, params, ALPHA)
    np.testing.assert_allclose(np.asarray(A_pred), np.asarray(A_ref),
                               rtol=1e-4, atol=1e-4)
    np.testing.assert_allclose(np.asarray(z), np.asarray(z_ref),
                               rtol=1e-4, atol=1e-4)

    assert A_pred.shape == (N, N) and z.shape == (N, EMBEDDING)
    print("KERNEL_OK")
</pallas_src>

<mosaic_0001>
module attributes {stable_mosaic.version = 11 : i64} {
  func.func @_gat_linear_kernel(%arg0: i32, %arg1: memref<256x128xf32, #tpu.memory_space<vmem>>, %arg2: memref<128x128xf32, #tpu.memory_space<vmem>>, %arg3: memref<128x128xf32, #tpu.memory_space<vmem>>, %arg4: memref<256x128xf32, #tpu.memory_space<vmem>>, %arg5: memref<256x128xf32, #tpu.memory_space<vmem>>) attributes {dimension_semantics = [#tpu.dimension_semantics<parallel>], iteration_bounds = array<i64: 2>, scalar_prefetch = 0 : i64, scratch_operands = 0 : i64, tpu.core_type = #tpu.core_type<tc>, window_params = [{transform_indices = @transform_0, window_bounds = array<i64: 256, 128>}, {pipeline_mode = #tpu.pipeline_mode<synchronous>, transform_indices = @transform_1, window_bounds = array<i64: 128, 128>}, {pipeline_mode = #tpu.pipeline_mode<synchronous>, transform_indices = @transform_2, window_bounds = array<i64: 128, 128>}, {transform_indices = @transform_3, window_bounds = array<i64: 256, 128>}, {transform_indices = @transform_4, window_bounds = array<i64: 256, 128>}]} {
    %c0 = arith.constant 0 : index
    %c0_0 = arith.constant 0 : index
    %0 = vector.load %arg1[%c0, %c0_0] : memref<256x128xf32, #tpu.memory_space<vmem>>, vector<256x128xf32>
    %c0_1 = arith.constant 0 : index
    %c0_2 = arith.constant 0 : index
    %1 = vector.load %arg2[%c0_1, %c0_2] : memref<128x128xf32, #tpu.memory_space<vmem>>, vector<128x128xf32>
    %cst = arith.constant dense<0.000000e+00> : vector<256x128xf32>
    %2 = tpu.matmul %0, %1, %cst {dimension_numbers = #tpu.dot_dimension_numbers<[1], [0], [0], [1], [0, 0, 1, 1], [], []>, precision = #tpu.contract_precision<fp32>} : vector<256x128xf32>, vector<128x128xf32>, vector<256x128xf32> -> vector<256x128xf32>
    %c0_3 = arith.constant 0 : index
    %c0_4 = arith.constant 0 : index
    %3 = vector.load %arg4[%c0_3, %c0_4] : memref<256x128xf32, #tpu.memory_space<vmem>>, vector<256x128xf32>
    tpu.vector_store %arg4[%c0_3, %c0_4], %2 {strides = array<i32>} : memref<256x128xf32, #tpu.memory_space<vmem>>, vector<256x128xf32>,
    %c0_5 = arith.constant 0 : index
    %c0_6 = arith.constant 0 : index
    %4 = vector.load %arg3[%c0_5, %c0_6] : memref<128x128xf32, #tpu.memory_space<vmem>>, vector<128x128xf32>
    %cst_7 = arith.constant dense<0.000000e+00> : vector<256x128xf32>
    %5 = tpu.matmul %2, %4, %cst_7 {dimension_numbers = #tpu.dot_dimension_numbers<[1], [0], [0], [1], [0, 0, 1, 1], [], []>, precision = #tpu.contract_precision<fp32>} : vector<256x128xf32>, vector<128x128xf32>, vector<256x128xf32> -> vector<256x128xf32>
    %c0_8 = arith.constant 0 : index
    %c0_9 = arith.constant 0 : index
    %6 = vector.load %arg5[%c0_8, %c0_9] : memref<256x128xf32, #tpu.memory_space<vmem>>, vector<256x128xf32>
    tpu.vector_store %arg5[%c0_8, %c0_9], %5 {strides = array<i32>} : memref<256x128xf32, #tpu.memory_space<vmem>>, vector<256x128xf32>,
    return
  }
  func.func @transform_0(%arg0: i32) -> (i32, i32) {
    %c0_i32 = arith.constant 0 : i32
    %c0_i32_0 = arith.constant 0 : i32
    return %arg0, %c0_i32 : i32, i32
  }
  func.func @transform_1(%arg0: i32) -> (i32, i32) {
    %c0_i32 = arith.constant 0 : i32
    %c0_i32_0 = arith.constant 0 : i32
    %c0_i32_1 = arith.constant 0 : i32
    return %c0_i32, %c0_i32_0 : i32, i32
  }
  func.func @transform_2(%arg0: i32) -> (i32, i32) {
    %c0_i32 = arith.constant 0 : i32
    %c0_i32_0 = arith.constant 0 : i32
    %c0_i32_1 = arith.constant 0 : i32
    return %c0_i32, %c0_i32_0 : i32, i32
  }
  func.func @transform_3(%arg0: i32) -> (i32, i32) {
    %c0_i32 = arith.constant 0 : i32
    %c0_i32_0 = arith.constant 0 : i32
    return %arg0, %c0_i32 : i32, i32
  }
  func.func @transform_4(%arg0: i32) -> (i32, i32) {
    %c0_i32 = arith.constant 0 : i32
    %c0_i32_0 = arith.constant 0 : i32
    return %arg0, %c0_i32 : i32, i32
  }
}

</mosaic_0001>

<bundles_post_ra>
// kernel: tpu_custom_call.1
= control target key start
LH: loop header
LB: loop body
LE: loop exit
PB: predicated region body
PF: predicated region fallthrough
CT: control target
= control target key end

     0   :  { %10 = vsyncpa [#allocation3], 0  ;;  %s9094_s0 = inlined_call_operand.hbm [shape: f32[512,128], index: 0, kind: input, shape index: {}]   ;;  %s9095_s1 = inlined_call_operand.hbm [shape: f32[128,128], index: 1, kind: input, shape index: {}]   ;;  %s9096_s2 = inlined_call_operand.hbm [shape: f32[128,128], index: 2, kind: input, shape index: {}]   ;;  %s9097_s3 = inlined_call_operand.hbm [shape: f32[512,128], index: 3, kind: output, shape index: {0}]   ;;  %s9098_s4 = inlined_call_operand.hbm [shape: f32[512,128], index: 4, kind: output, shape index: {1}]  }
   0x1   :  { %12 = vsyncpa [#allocation3 + $0x1], 0 }
   0x2   :  { %13 = vsyncpa [#allocation6], 0 }
   0x3   :  { %14 = vsyncpa [#allocation4], 0 }
   0x4   :  { %16 = vsyncpa [#allocation4 + $0x1], 0 }
   0x5   :  { %17 = vsyncpa [#allocation10], 0 }
   0x6   :  { %19 = vsyncpa [#allocation10 + $0x1], 0  ;;  %s7059_s15 = smov 0   ;;  %s7061_s16 = smov 0  }
   0x7   :  { %s7063_s17 = smov 0   ;;  %s7065_s18 = smov 0  }
   0x8 LB: > { %s7080_s19 = sadd.s32 4294967295, %s7023_s18   ;;  %s4494_s20 = sadd.s32 4294967294, %s7023_s18   ;;  %s7023_s18 = sphi %s7065_s18, %s9819_s18   ;;  %s7019_s17 = sphi %s7063_s17, %s9818_s17   ;;  %s7015_s16 = sphi %s7061_s16, %s9817_s16   ;;  %s7011_s15 = sphi %s7059_s15, %s9816_s15  }
   0x9   : > { %p45_p0 = scmp.ne.s32.totalorder %s7015_s16, %s7011_s15  ;;  %p9099_p1 = scmp.eq.s32.totalorder %s7080_s19, 0 }
   0xa   : > { %p117_p3 = scmp.eq.s32.totalorder %s4494_s20, 1  ;;  %p4495_p5 = scmp.ge.s32.totalorder %s7023_s18, 1 }
   0xb   : > { %p7089_p4 = por %p9099_p1, %p45_p0  ;;  %p150_p7 = scmp.lt.s32.totalorder %s7023_s18, 3 }
   0xc   : > { %p7094_p6 = por %p117_p3, %p45_p0  ;;  %s7025_s24 = smov [#allocation5]  }
   0xd   : > { %s9410_s21 = scalar_select %p7089_p4, 1, 0 }
   0xe   : > { %s9411_s22 = scalar_select %p7094_p6, 1, 0 }
   0xf   : > { %p7099_p8 = pnand %p4495_p5, %p150_p7  ;;  %s162_s25 = sshll.u32 %s7025_s24, 4  ;;  %s7103_s25 = int_to_ptr.vmem [resolvable:$true] %s162_s25 }
  0x10   : > { %s7026_s27 = smov [#allocation7]   ;;  %s6835_s5 = scalar_lea.hbm %s9095_s1, 2048 }
  0x11   : > { %p6773_p9 = pneg %p7099_p8  ;;  %s175_s28 = sshll.u32 %s7026_s27, 4  ;;  %s7114_s28 = int_to_ptr.vmem [resolvable:$true] %s175_s28 }
  0x12   : > { %p6836_p12 = scmp.ne.s32.totalorder %s9095_s1, %s6835_s5  ;;  %p6842_p5 = scmp.lt.u32.totalorder %s6835_s5, %s9095_s1 }
  0x13   : > { %p7110_p11 = pnand %p6773_p9, %p9099_p1 }
  0x15   : > { %p6837_p13 = pneg %p7110_p11 }
  0x17   : > { %p6838_p0 = pnand %p6837_p13, %p6836_p12 }
  0x19   : > { %p6839_p3 = pneg %p6838_p0 }
  0x1b   : > { %p6844_p7 = pnand %p6842_p5, %p6839_p3 }
  0x1d   : > { %6847 = shalt.err (!%p6844_p7)
}
  0x1e   : > { %s6848_s10 = scalar_lea.vmem %s7103_s25, 2048  ;;  %p6856_p2 = scmp.lt.s32.totalorder %s7103_s25, %s7103_s25 }
  0x1f   : > { %p6849_p9 = scmp.ne.s32.totalorder %s7103_s25, %s6848_s10  ;;  %p6857_p12 = scmp.lt.s32.totalorder %s6848_s10, %s6848_s10 }
  0x21   : > { %p6851_p10 = pnand %p6849_p9, %p6837_p13  ;;  %p6858_p0 = por %p6857_p12, %p6856_p2 }
  0x23   : > { %p6852_p1 = pneg %p6851_p10 }
  0x25   : > { %p6859_p6 = pnand %p6858_p0, %p6852_p1 }
  0x27   : > { %6862 = shalt.err (!%p6859_p6)
}
  0x28   : > { %s7027_s11 = smov 128   ;;  %s7028_s12 = smov 8  }
  0x29   : > { %6776 = dma.hbm_to_vmem [thread:$0]  (!%p7110_p11), %s9095_s1, 2048, %s7103_s25, [#allocation6], %s7027_s11, %s7027_s11, %s7028_s12  }
  0x2a   : > { %s6863_s27 = scalar_lea.hbm %s9096_s2, 2048 }
  0x2b   : > { %p6864_p1 = scmp.ne.s32.totalorder %s9096_s2, %s6863_s27  ;;  %p6870_p10 = scmp.lt.u32.totalorder %s6863_s27, %s9096_s2 }
  0x2d   : > { %p6866_p2 = pnand %p6864_p1, %p6837_p13 }
  0x2f   : > { %p6867_p6 = pneg %p6866_p2 }
  0x31   : > { %p6872_p3 = pnand %p6870_p10, %p6867_p6 }
  0x33   : > { %6875 = shalt.err (!%p6872_p3)
}
  0x34   : > { %s6876_s25 = scalar_lea.vmem %s7114_s28, 2048  ;;  %p6884_p12 = scmp.lt.s32.totalorder %s7114_s28, %s7114_s28 }
  0x35   : > { %p6877_p5 = scmp.ne.s32.totalorder %s7114_s28, %s6876_s25  ;;  %p6885_p0 = scmp.lt.s32.totalorder %s6876_s25, %s6876_s25 }
  0x37   : > { %p6879_p7 = pnand %p6877_p5, %p6837_p13  ;;  %p6886_p1 = por %p6885_p0, %p6884_p12 }
  0x39   : > { %p6880_p9 = pneg %p6879_p7 }
  0x3b   : > { %p6887_p2 = pnand %p6886_p1, %p6880_p9 }
  0x3d   : > { %6890 = shalt.err (!%p6887_p2)
}
  0x3e   : > { %6779 = dma.hbm_to_vmem [thread:$0]  (!%p7110_p11), %s9096_s2, 2048, %s7114_s28, [#allocation6], %s7027_s11, %s7027_s11, %s7028_s12  }
  0x3f   : > { %s7175_s26 = sadd.s32 1, %s7023_s18   ;;  %s32_s9 = sadd.s32 1, %s7019_s17 }
  0x40   : > { %s29_s10 = ssub.s32 %s7023_s18, %s7175_s26  ;;  %p39_p13 = scmp.ne.s32.totalorder %s7019_s17, %s7015_s16 }
  0x41   : > { %p30_p6 = scmp.eq.s32.totalorder %s29_s10, 0  ;;  %p40_p10 = scmp.eq.s32.totalorder %s7023_s18, 0 }
  0x42   : > { %p9414_p3 = scmp.eq.s32.totalorder %s7080_s19, 1  ;;  %p6793_p7 = scmp.lt.s32.totalorder %s7023_s18, 2 }
  0x43   : > { %s7191_s14 = scalar_select %p30_p6, %s7019_s17, %s32_s9  }
  0x44   : > { %p7185_p5 = por %p9414_p3, %p39_p13  ;;  %p41_p9 = por %p40_p10, %p39_p13 }
  0x45   : > { %s189_s20 = sand.u32 1, %s7019_s17   ;;  %s4516_s28 = sshll.u32 %s7023_s18, 12 }
  0x46   : > { %s9415_s13 = scalar_select %p7185_p5, 1, 0 }
  0x47   : > { %s4499_s24 = sshll.u32 %s189_s20, 8  ;;  %s7198_s30 = scalar_lea.hbm %s9094_s0, %s4516_s28 }
  0x48   : > { %s193_s5 = scalar_lea.vmem [#allocation2], %s4499_s24  ;;  %p7202_p11 = pnand %p6793_p7, %p41_p9 }
  0x49   : > { %s200_s6 = sshll.u32 %s193_s5, 4  ;;  %s7206_s7 = scalar_lea.sflag [#allocation3], %s189_s20  ;;  %s7200_s6 = int_to_ptr.vmem [resolvable:$true] %s200_s6 }
  0x4a   : > { %s6891_s8 = scalar_lea.hbm %s7198_s30, 4096  ;;  %p6893_p0 = pneg %p7202_p11 }
  0x4b   : > { %p6892_p12 = scmp.ne.s32.totalorder %s7198_s30, %s6891_s8  ;;  %s6896_s24 = scalar_lea.hbm %s9094_s0, 8192 }
  0x4c   : > { %p6897_p13 = scmp.lt.u32.totalorder %s7198_s30, %s9094_s0  ;;  %p6898_p6 = scmp.lt.u32.totalorder %s6896_s24, %s6891_s8 }
  0x4d   : > { %p6894_p1 = pnand %p6893_p0, %p6892_p12  ;;  %p6900_p3 = scmp.lt.u32.totalorder %s6891_s8, %s7198_s30 }
  0x4e   : > { %p6899_p10 = por %p6898_p6, %p6897_p13 }
  0x4f   : > { %p6895_p2 = pneg %p6894_p1 }
  0x50   : > { %p6901_p7 = por %p6900_p3, %p6899_p10 }
  0x52   : > { %p6902_p9 = pnand %p6901_p7, %p6895_p2 }
  0x54   : > { %6905 = shalt.err (!%p6902_p9)
}
  0x55   : > { %s6906_s20 = scalar_lea.vmem %s7200_s6, 4096  ;;  %s7029_s29 = smov [#allocation2]  }
  0x56   : > { %p6907_p12 = scmp.ne.s32.totalorder %s7200_s6, %s6906_s20  ;;  %s6911_s5 = sshll.u32 %s7029_s29, 4  ;;  %s6912_s5 = int_to_ptr.vmem [resolvable:$false] %s6911_s5 }
  0x57   : > { %s6913_s9 = scalar_lea.vmem %s6912_s5, 8192  ;;  %p6914_p4 = scmp.lt.s32.totalorder %s7200_s6, %s6912_s5 }
  0x58   : > { %p6909_p1 = pnand %p6907_p12, %p6893_p0  ;;  %p6915_p13 = scmp.lt.s32.totalorder %s6913_s9, %s6906_s20 }
  0x5a   : > { %p6910_p5 = pneg %p6909_p1  ;;  %p6916_p6 = por %p6915_p13, %p6914_p4 }
  0x5c   : > { %p6917_p10 = pnand %p6916_p6, %p6910_p5 }
  0x5e   : > { %6920 = shalt.err (!%p6917_p10)
}
  0x5f   : > { %6783 = dma.hbm_to_vmem [thread:$0]  (!%p7202_p11), %s7198_s30, 4096, %s7200_s6, %s7206_s7, %s7027_s11, %s7027_s11, %s7028_s12  }
  0x60   : > { %212 = sbr.rel (%p7099_p8) target bundleno = 1300 (0x514), region = 32 }
  0x67   : > { %s7240_s8 = sand.u32 1, %s7015_s16   ;;  %p9417_p4 = scmp.ne.s32.totalorder %s9410_s21, 0 }
  0x68   : > { %s7243_s10 = sshll.u32 %s7240_s8, 8  ;;  %s215_s25 = scalar_lea.sflag [#allocation3], %s7240_s8 }
  0x69   : > { %s7247_s24 = scalar_lea.vmem [#allocation2], %s7243_s10 }
  0x6a   : > { %6994 = dma.done.wait (%p9417_p4), %s215_s25, 4096  }
  0x6b   : > { %6996 = vsyncadd (%p9417_p4), %s215_s25, 4294963200  ;;  %p9418_p5 = scmp.eq.s32.totalorder %s7080_s19, 0 }
  0x6d   : > { %6998 = dma.done.wait (%p9418_p5), [#allocation6], 4096   ;;  %p9419_p8 = pmov %p9418_p5 }
  0x6e   : > { %v291_v0 = vld [vmem:[#allocation5] sm:$0xff]  ;;  %v292_v1 = vld [vmem:[#allocation5 + $0x8] sm:$0xff]  ;;  %v293_v2 = vld [vmem:[#allocation5 + $0x10] sm:$0xff]  ;;  %s8337_s21 = scalar_lea.vmem [#allocation8], %s7243_s10  ;;  %s4517_s23 = sshll.u32 %s7080_s19, 12 }
  0x6f   : > { %7000 = vsyncadd (%p9419_p8), [#allocation6], 4294963200  ;;  %v308_v3 = vand.u32 4294901760, %v291_v0  ;;  %v311_v4 = vand.u32 4294901760, %v292_v1  ;;  %v294_v5 = vld [vmem:[#allocation5 + $0x18] sm:$0xff]  ;;  %v314_v6 = vand.u32 4294901760, %v293_v2  ;;  %s8973_s6 = scalar_lea.hbm %s9097_s3, %s4517_s23 }
  0x70   : > { %v7257_v7 = vld [vmem:[#allocation5 + $0x20] sm:$0xff]  ;;  %v7259_v8 = vld [vmem:[#allocation5 + $0x28] sm:$0xff]  ;;  %v317_v9 = vand.u32 4294901760, %v294_v5  ;;  %v7267_v14 = vld [vmem:[#allocation5 + $0x30] sm:$0xff]  ;;  %s4354_s11 = sshll.u32 %s8337_s21, 4  ;;  %s4336_s7 = scalar_lea.sflag [#allocation4], %s7240_s8  ;;  %s8975_s11 = int_to_ptr.vmem [resolvable:$true] %s4354_s11 }
  0x71   : > { %v7261_v10 = vpack.c.bf16 %v311_v4, %v308_v3  ;;  %v320_v11 = vand.u32 4294901760, %v7257_v7  ;;  %v323_v12 = vand.u32 4294901760, %v7259_v8  ;;  %v7269_v15 = vld [vmem:[#allocation5 + $0x38] sm:$0xff]  ;;  %v259_v16 = vld [vmem:[%s7247_s24] sm:$0xff]  ;;  %v326_v19 = vand.u32 4294901760, %v7267_v14  ;;  %v7287_v22 = vld [vmem:[#allocation5 + $0x48] sm:$0xff] }
  0x72   : > { %v7265_v13 = vpack.c.bf16 %v317_v9, %v314_v6  ;;  %v7274_v17 = vand.u32 4294901760, %v259_v16  ;;  %v329_v20 = vand.u32 4294901760, %v7269_v15  ;;  %v7285_v21 = vld [vmem:[#allocation5 + $0x40] sm:$0xff]  ;;  %v260_v25 = vld [vmem:[%s7247_s24 + $0x8] sm:$0xff]  ;;  %v9116_v28 = vand.u32 4294901760, %v7287_v22  ;;  %v7304_v29 = vld [vmem:[#allocation5 + $0x50] sm:$0xff] }
  0x73   : > { %6056 = vmatprep.subr.bf16.mxu0 %v7261_v10  ;;  %v7281_v18 = vpack.c.bf16 %v323_v12, %v320_v11  ;;  %v9118_v27 = vand.u32 4294901760, %v7285_v21  ;;  %v7306_v30 = vld [vmem:[#allocation5 + $0x58] sm:$0xff]  ;;  %v261_v32 = vld [vmem:[%s7247_s24 + $0x10] sm:$0xff]  ;;  %v7312_v33 = vand.u32 4294901760, %v260_v25  ;;  %v7316_v35 = vld [vmem:[#allocation5 + $0x60] sm:$0xff]  ;;  %v7320_v38 = vsub.f32 %v291_v0, %v308_v3  ;;  %s6921_s28 = scalar_lea.vmem %s8975_s11, 4096 }
  0x74   : > { %9420 = vst [vmem:[#allocation15_spill] sm:$0xff] %v7265_v13  ;;  %6058 = vmatpush3.bf16.msra.mxu0 %v7261_v10  ;;  %v7290_v23 = vsub.f32 %v259_v16, %v7274_v17  ;;  %v7300_v26 = vpack.c.bf16 %v329_v20, %v326_v19  ;;  %v262_v34 = vld [vmem:[%s7247_s24 + $0x18] sm:$0xff]  ;;  %v7318_v36 = vld [vmem:[#allocation5 + $0x68] sm:$0xff]  ;;  %v7322_v39 = vsub.f32 %v292_v1, %v311_v4  ;;  %v263_v40 = vld [vmem:[%s7247_s24 + $0x20] sm:$0xff]  ;;  %v9115_v42 = vand.u32 4294901760, %v7304_v29  ;;  %p6922_p11 = scmp.ne.s32.totalorder %s8975_s11, %s6921_s28  ;;  %p9813_p0 = scmp.ne.s32.totalorder %s9415_s13, 0 }
  0x75   : > { %6060 = vmatprep.subr.bf16.mxu0 %v7265_v13  ;;  %9421 = vst [vmem:[#allocation16_spill] sm:$0xff] %v7281_v18  ;;  %v7330_v41 = vpack.c.bf16 %v9116_v28, %v9118_v27  ;;  %v9113_v43 = vand.u32 4294901760, %v7306_v30  ;;  %v7334_v44 = vand.u32 4294901760, %v261_v32  ;;  %v7336_v45 = vand.u32 4294901760, %v262_v34  ;;  %v264_v46 = vld [vmem:[%s7247_s24 + $0x28] sm:$0xff]  ;;  %v7341_v49 = vld [vmem:[#allocation5 + $0x70] sm:$0xff] }
  0x76   : > { %9422 = vst [vmem:[#allocation17_spill] sm:$0xff] %v7290_v23  ;;  %v9102_v24 = vand.u32 4294901760, %v7290_v23  ;;  %9423 = vst [vmem:[#allocation18_spill] sm:$0xff] %v7300_v26  ;;  %v9111_v47 = vand.u32 4294901760, %v7316_v35  ;;  %v9108_v48 = vand.u32 4294901760, %v7318_v36  ;;  %v7343_v50 = vld [vmem:[#allocation5 + $0x78] sm:$0xff]  ;;  %v7346_v51 = vsub.f32 %v260_v25, %v7312_v33  ;;  %p6923_p2 = pnand %p6922_p11, %p9813_p0 }
  0x77   : > { %9424 = vst [vmem:[#allocation19_spill] sm:$0xff] %v7330_v41  ;;  %v7348_v52 = vand.u32 4294901760, %v263_v40  ;;  %v9105_v53 = vand.u32 4294901760, %v7320_v38  ;;  %v9103_v54 = vand.u32 4294901760, %v7322_v39  ;;  %v7353_v55 = vsub.f32 %v293_v2, %v314_v6  ;;  %v265_v6 = vld [vmem:[%s7247_s24 + $0x30] sm:$0xff]  ;;  %v270_v27 = vld [vmem:[%s7247_s24 + $0x58] sm:$0xff] }
  0x78   : > { %6062 = vmatpush3.bf16.msra.mxu0 %v7265_v13  ;;  %v391_v31 = vsub.f32 %v7290_v23, %v9102_v24  ;;  %9425 = vst [vmem:[#allocation20_spill] sm:$0xff] %v7346_v51  ;;  %v7355_v56 = vsub.f32 %v294_v5, %v317_v9  ;;  %v7362_v57 = vpack.c.bf16 %v9113_v43, %v9115_v42  ;;  %v7367_v59 = vand.u32 4294901760, %v264_v46  ;;  %v266_v9 = vld [vmem:[%s7247_s24 + $0x38] sm:$0xff]  ;;  %p6924_p3 = pneg %p6923_p2  ;;  %s7030_s27 = smov [#allocation8]  }
  0x79   : > { %6064 = vmatprep.subr.bf16.mxu0 %v7281_v18  ;;  %9426 = vst [vmem:[#allocation21_spill] sm:$0xff] %v7353_v55  ;;  %v7365_v58 = vsub.f32 %v261_v32, %v7334_v44  ;;  %v9107_v60 = vand.u32 4294901760, %v7341_v49  ;;  %v9106_v61 = vand.u32 4294901760, %v7343_v50  ;;  %v7372_v62 = vsub.f32 %v262_v34, %v7336_v45  ;;  %s6925_s20 = sshll.u32 %s7030_s27, 4  ;;  %s6926_s20 = int_to_ptr.vmem [resolvable:$false] %s6925_s20 }
  0x7a   : > { %v392_v37 = vand.u32 4294901760, %v391_v31  ;;  %9427 = vst [vmem:[#allocation22_spill] sm:$0xff] %v7355_v56  ;;  %9428 = vst [vmem:[#allocation23_spill] sm:$0xff] %v7362_v57  ;;  %v7378_v63 = vpack.c.bf16 %v9108_v48, %v9111_v47  ;;  %v9104_v0 = vand.u32 4294901760, %v7346_v51  ;;  %v7382_v1 = vsub.f32 %v263_v40, %v7348_v52  ;;  %v269_v48 = vld [vmem:[%s7247_s24 + $0x50] sm:$0xff]  ;;  %s6927_s29 = scalar_lea.vmem %s6926_s20, 8192  ;;  %p6928_p7 = scmp.lt.s32.totalorder %s8975_s11, %s6926_s20 }
  0x7b   : > { %9429 = vst [vmem:[#allocation24_spill] sm:$0xff] %v7365_v58  ;;  %9430 = vst [vmem:[#allocation25_spill] sm:$0xff] %v7372_v62  ;;  %v712_v2 = vsub.f32 %v7320_v38, %v9105_v53  ;;  %v719_v3 = vsub.f32 %v7322_v39, %v9103_v54  ;;  %v9109_v4 = vand.u32 4294901760, %v7353_v55  ;;  %v9110_v5 = vand.u32 4294901760, %v7355_v56  ;;  %v268_v53 = vld [vmem:[%s7247_s24 + $0x48] sm:$0xff]  ;;  %p6929_p9 = scmp.lt.s32.totalorder %s6927_s29, %s6921_s28 }
  0x7c   : > { %6066 = vmatpush3.bf16.msra.mxu0 %v7281_v18  ;;  %5127 = vmatprep.mubr.f32.mxu0 %v392_v37  ;;  %9431 = vst [vmem:[#allocation26_spill] sm:$0xff] %v7378_v63  ;;  %9432 = vst [vmem:[#allocation27_spill] sm:$0xff] %v7382_v1  ;;  %v9112_v16 = vand.u32 4294901760, %v7365_v58  ;;  %v7398_v25 = vsub.f32 %v264_v46, %v7367_v59  ;;  %v7403_v31 = vsub.f32 %v7257_v7, %v320_v11 }
  0x7d   : > { %6068 = vmatprep.subr.bf16.mxu0 %v7300_v26  ;;  %v7408_v32 = vsub.f32 %v7259_v8, %v323_v12  ;;  %v7414_v34 = vpack.c.bf16 %v9106_v61, %v9107_v60  ;;  %v9114_v37 = vand.u32 4294901760, %v7372_v62  ;;  %v401_v40 = vsub.f32 %v7346_v51, %v9104_v0  ;;  %v267_v8 = vld [vmem:[%s7247_s24 + $0x40] sm:$0xff]  ;;  %p6930_p12 = por %p6929_p9, %p6928_p7 }
  0x7e   : > { %9433 = vst [vmem:[#allocation28_spill] sm:$0xff] %v7398_v25  ;;  %9434 = vst [vmem:[#allocation29_spill] sm:$0xff] %v7403_v31  ;;  %v9117_v7 = vand.u32 4294901760, %v7382_v1  ;;  %v7421_v11 = vand.u32 4294901760, %v265_v6  ;;  %v7423_v46 = vand.u32 4294901760, %v266_v9  ;;  %v713_v12 = vand.u32 4294901760, %v712_v2 }
  0x7f   : > { %9435 = vst [vmem:[#allocation30_spill] sm:$0xff] %v7408_v32  ;;  %9436 = vst [vmem:[#allocation31_spill] sm:$0xff] %v7414_v34  ;;  %v720_v24 = vand.u32 4294901760, %v719_v3  ;;  %v726_v54 = vsub.f32 %v7353_v55, %v9109_v4  ;;  %v733_v0 = vsub.f32 %v7355_v56, %v9110_v5  ;;  %v411_v61 = vsub.f32 %v7365_v58, %v9112_v16  ;;  %v278_v58 = vld [vmem:[%s7247_s24 + $0x98] sm:$0xff]  ;;  %p6931_p1 = pnand %p6930_p12, %p6924_p3 }
  0x80   : > { %6070 = vmatpush3.bf16.msra.mxu0 %v7300_v26  ;;  %v9121_v60 = vand.u32 4294901760, %v7398_v25  ;;  %v9119_v2 = vand.u32 4294901760, %v7403_v31  ;;  %v9120_v3 = vand.u32 4294901760, %v7408_v32  ;;  %v7445_v4 = vsub.f32 %v7372_v62, %v9114_v37 }
  0x81   : > { %6072 = vmatprep.subr.bf16.mxu0 %v7330_v41  ;;  %v7447_v5 = vand.u32 4294901760, %v267_v8  ;;  %v7452_v47 = vsub.f32 %v7267_v14, %v326_v19  ;;  %v7457_v16 = vsub.f32 %v7269_v15, %v329_v20  ;;  %v7462_v43 = vsub.f32 %v7382_v1, %v9117_v7 }
  0x82   : > { %v7465_v37 = vsub.f32 %v265_v6, %v7421_v11  ;;  %v7468_v42 = vsub.f32 %v266_v9, %v7423_v46  ;;  %v7470_v28 = vand.u32 4294901760, %v268_v53  ;;  %v6087_v14 = vpack.c.bf16 %v720_v24, %v713_v12 }
  0x83   : > { %9437 = vst [vmem:[#allocation32_spill] sm:$0xff] %v7452_v47  ;;  %9438 = vst [vmem:[#allocation33_spill] sm:$0xff] %v7457_v16  ;;  %v727_v19 = vand.u32 4294901760, %v726_v54  ;;  %v734_v15 = vand.u32 4294901760, %v733_v0  ;;  %v7473_v20 = vand.u32 4294901760, %v269_v48  ;;  %v740_v6 = vsub.f32 %v7403_v31, %v9119_v2  ;;  %v271_v2 = vld [vmem:[%s7247_s24 + $0x60] sm:$0xff] }
  0x84   : > { %6074 = vmatpush3.bf16.msra.mxu0 %v7330_v41  ;;  %9439 = vst [vmem:[#allocation34_spill] sm:$0xff] %v7465_v37  ;;  %9440 = vst [vmem:[#allocation35_spill] sm:$0xff] %v7468_v42  ;;  %v747_v9 = vsub.f32 %v7408_v32, %v9120_v3  ;;  %v402_v24 = vand.u32 4294901760, %v401_v40  ;;  %v7487_v54 = vsub.f32 %v7398_v25, %v9121_v60  ;;  %v412_v12 = vand.u32 4294901760, %v411_v61  ;;  %v272_v3 = vld [vmem:[%s7247_s24 + $0x68] sm:$0xff] }
  0x85   : > { %6076 = vmatprep.subr.bf16.mxu0 %v7362_v57  ;;  %v7490_v0 = vsub.f32 %v267_v8, %v7447_v5  ;;  %v7495_v7 = vsub.f32 %v268_v53, %v7470_v28  ;;  %v422_v40 = vand.u32 4294901760, %v7445_v4  ;;  %v432_v60 = vand.u32 4294901760, %v7462_v43 }
  0x86   : > { %v741_v61 = vand.u32 4294901760, %v740_v6  ;;  %v748_v8 = vand.u32 4294901760, %v747_v9  ;;  %v9444_v53 = vand.u32 4294901760, %v7452_v47  ;;  %v442_v43 = vand.u32 4294901760, %v7487_v54 }
  0x87   : > { %9441 = vst [vmem:[#allocation36_spill] sm:$0xff] %v7490_v0  ;;  %9442 = vst [vmem:[#allocation37_spill] sm:$0xff] %v7495_v7  ;;  %v9448_v9 = vand.u32 4294901760, %v7465_v37  ;;  %v9449_v26 = vand.u32 4294901760, %v7468_v42  ;;  %v9450_v25 = vand.u32 4294901760, %v7287_v22  ;;  %v9466_v13 = vand.u32 4294901760, %v7306_v30 }
  0x88   : > { %6078 = vmatpush3.bf16.msra.mxu0 %v7362_v57  ;;  %v7502_v57 = vsub.f32 %v269_v48, %v7473_v20  ;;  %v754_v41 = vsub.f32 %v7452_v47, %v9444_v53  ;;  %v7514_v48 = vand.u32 4294901760, %v270_v27 }
  0x89   : > { %6080 = vmatprep.subr.bf16.mxu0 %v7378_v63  ;;  %v451_v53 = vsub.f32 %v7465_v37, %v9448_v9  ;;  %v7534_v18 = vsub.f32 %v7287_v22, %v9450_v25  ;;  %v6095_v9 = vpack.c.bf16 %v748_v8, %v741_v61  ;;  %v274_v37 = vld [vmem:[%s7247_s24 + $0x78] sm:$0xff]  ;;  %v9454_v22 = vand.u32 4294901760, %v7490_v0 }
  0x8a   : > { %9443 = vst [vmem:[#allocation38_spill] sm:$0xff] %v7502_v57  ;;  %v755_v54 = vand.u32 4294901760, %v754_v41  ;;  %v9457_v8 = vand.u32 4294901760, %v7495_v7 }
  0x8b   : > { %9451 = vst [vmem:[#allocation40_spill] sm:$0xff] %v7534_v18  ;;  %v9149_v1 = vand.u32 4294901760, %v7534_v18  ;;  %v471_v25 = vsub.f32 %v7490_v0, %v9454_v22  ;;  %v452_v41 = vand.u32 4294901760, %v451_v53  ;;  %v275_v22 = vld [vmem:[%s7247_s24 + $0x80] sm:$0xff]  ;;  %v9458_v0 = vand.u32 4294901760, %v7502_v57 }
  0x8c   : > { %6082 = vmatpush3.bf16.msra.mxu0 %v7378_v63  ;;  %v6091_v63 = vpack.c.bf16 %v734_v15, %v727_v19  ;;  %v9446_v15 = vand.u32 4294901760, %v7285_v21  ;;  %v273_v19 = vld [vmem:[%s7247_s24 + $0x70] sm:$0xff] }
  0x8d   : > { %6084 = vmatprep.subr.bf16.mxu0 %v7414_v34 }
  0x8e   : > { %v7519_v6 = vsub.f32 %v7285_v21, %v9446_v15  ;;  %v7539_v15 = vand.u32 4294901760, %v272_v3 }
  0x90   : > { %6086 = vmatpush3.bf16.msra.mxu0 %v7414_v34  ;;  %v9445_v34 = vand.u32 4294901760, %v7457_v16  ;;  %9447 = vst [vmem:[#allocation39_spill] sm:$0xff] %v7519_v6  ;;  %9453 = vst [vmem:[#allocation42_spill] sm:$0xff] %v7539_v15 }
  0x91   : > { %6088 = vmatprep.subr.bf16.mxu0 %v6087_v14 }
  0x92   : > { %v761_v4 = vsub.f32 %v7457_v16, %v9445_v34  ;;  %v7527_v34 = vsub.f32 %v7468_v42, %v9449_v26  ;;  %v9144_v26 = vand.u32 4294901760, %v7519_v6 }
  0x93   : > { %5128 = vmatmul.mubr.f32.vlgmr.msra.gmra.mrb[0].mxu0 %v402_v24  ;;  %v7537_v24 = vand.u32 4294901760, %v271_v2 }
  0x94   : > { %6090 = vmatpush3.bf16.msra.mxu0 %v6087_v14  ;;  %5130 = vmatprep.mubr.f32.mxu0 %v412_v12  ;;  %v762_v42 = vand.u32 4294901760, %v761_v4  ;;  %v7548_v14 = vsub.f32 %v270_v27, %v7514_v48  ;;  %v7550_v12 = vand.u32 4294901760, %v273_v19  ;;  %v768_v21 = vsub.f32 %v7519_v6, %v9144_v26  ;;  %v276_v26 = vld [vmem:[%s7247_s24 + $0x88] sm:$0xff] }
  0x95   : > { %9452 = vst [vmem:[#allocation41_spill] sm:$0xff] %v7537_v24  ;;  %6092 = vmatprep.subr.bf16.mxu0 %v6091_v63  ;;  %v462_v61 = vand.u32 4294901760, %v7527_v34  ;;  %v7559_v4 = vsub.f32 %v7495_v7, %v9457_v8  ;;  %v775_v27 = vsub.f32 %v7534_v18, %v9149_v1  ;;  %v7571_v53 = vsub.f32 %v271_v2, %v7537_v24 }
  0x96   : > { %9455 = vst [vmem:[#allocation43_spill] sm:$0xff] %v7548_v14  ;;  %9456 = vst [vmem:[#allocation44_spill] sm:$0xff] %v7550_v12  ;;  %v7574_v34 = vsub.f32 %v272_v3, %v7539_v15  ;;  %v7576_v8 = vand.u32 4294901760, %v274_v37  ;;  %v6099_v7 = vpack.c.bf16 %v762_v42, %v755_v54  ;;  %v769_v62 = vand.u32 4294901760, %v768_v21 }
  0x97   : > { %5131 = vmatmul.mubr.f32.gmra.mrb[2].mxu0 %v422_v40  ;;  %v7568_v40 = vsub.f32 %v7502_v57, %v9458_v0  ;;  %9459 = vst [vmem:[#allocation45_spill] sm:$0xff] %v7571_v53  ;;  %v776_v1 = vand.u32 4294901760, %v775_v27  ;;  %v7587_v57 = vsub.f32 %v273_v19, %v7550_v12  ;;  %v7589_v3 = vand.u32 4294901760, %v275_v22 }
  0x98   : > { %5133 = vmatprep.mubr.f32.mxu0 %v432_v60  ;;  %6094 = vmatpush3.bf16.msra.mxu0 %v6091_v63  ;;  %9460 = vst [vmem:[#allocation46_spill] sm:$0xff] %v7574_v34  ;;  %9461 = vst [vmem:[#allocation47_spill] sm:$0xff] %v7576_v8  ;;  %v277_v60 = vld [vmem:[%s7247_s24 + $0x90] sm:$0xff]  ;;  %v9462_v63 = vand.u32 4294901760, %v7304_v29  ;;  %v7594_v42 = vsub.f32 %v7306_v30, %v9466_v13  ;;  %v472_v54 = vand.u32 4294901760, %v471_v25  ;;  %v482_v21 = vand.u32 4294901760, %v7559_v4 }
  0x99   : > { %6096 = vmatprep.subr.bf16.mxu0 %v6095_v9  ;;  %9464 = vst [vmem:[#allocation49_spill] sm:$0xff] %v7587_v57  ;;  %9465 = vst [vmem:[#allocation50_spill] sm:$0xff] %v7589_v3  ;;  %v7597_v27 = vand.u32 4294901760, %v276_v26  ;;  %v492_v19 = vand.u32 4294901760, %v7568_v40  ;;  %v7602_v2 = vand.u32 4294901760, %v277_v60  ;;  %v6103_v25 = vpack.c.bf16 %v776_v1, %v769_v62  ;;  %v279_v13 = vld [vmem:[%s7247_s24 + $0xa0] sm:$0xff] }
  0x9a   : > { %v7583_v0 = vsub.f32 %v7304_v29, %v9462_v63  ;;  %9467 = vst [vmem:[#allocation51_spill] sm:$0xff] %v7594_v42  ;;  %v7618_v63 = vsub.f32 %v275_v22, %v7589_v3  ;;  %v9473_v30 = vand.u32 4294901760, %v7594_v42  ;;  %v7627_v1 = vand.u32 4294901760, %v278_v58 }
  0x9b   : > { %5134 = vmatmul.mubr.f32.gmra.mrb[4].mxu0 %v442_v43  ;;  %9468 = vst [vmem:[#allocation52_spill] sm:$0xff] %v7597_v27  ;;  %9469 = vst [vmem:[#allocation53_spill] sm:$0xff] %v7602_v2  ;;  %v7608_v43 = vsub.f32 %v274_v37, %v7576_v8  ;;  %v7625_v62 = vsub.f32 %v276_v26, %v7597_v27  ;;  %v9478_v22 = vand.u32 4294901760, %v7571_v53  ;;  %v9480_v26 = vand.u32 4294901760, %v7318_v36 }
  0x9c   : > { %9463 = vst [vmem:[#allocation48_spill] sm:$0xff] %v7583_v0  ;;  %v9156_v29 = vand.u32 4294901760, %v7583_v0  ;;  %5136 = vmatprep.mubr.f32.mxu0 %v452_v41  ;;  %6098 = vmatpush3.bf16.msra.mxu0 %v6095_v9  ;;  %v9471_v41 = vand.u32 4294901760, %v7548_v14  ;;  %9472 = vst [vmem:[#allocation55_spill] sm:$0xff] %v7618_v63  ;;  %v789_v37 = vsub.f32 %v7594_v42, %v9473_v30 }
  0x9d   : > { %6100 = vmatprep.subr.bf16.mxu0 %v6099_v7  ;;  %9470 = vst [vmem:[#allocation54_spill] sm:$0xff] %v7608_v43  ;;  %9474 = vst [vmem:[#allocation56_spill] sm:$0xff] %v7625_v62  ;;  %v7638_v30 = vsub.f32 %v277_v60, %v7602_v2  ;;  %v7643_v51 = vsub.f32 %v7318_v36, %v9480_v26  ;;  %v9484_v60 = vand.u32 4294901760, %v7587_v57 }
  0x9e   : > { %v782_v9 = vsub.f32 %v7583_v0, %v9156_v29  ;;  %v501_v4 = vsub.f32 %v7548_v14, %v9471_v41  ;;  %9475 = vst [vmem:[#allocation57_spill] sm:$0xff] %v7627_v1  ;;  %v9476_v41 = vand.u32 4294901760, %v7316_v35  ;;  %v511_v14 = vsub.f32 %v7571_v53, %v9478_v22  ;;  %v280_v22 = vld [vmem:[%s7247_s24 + $0xa8] sm:$0xff] }
  0x9f   : > { %5137 = vmatmul.mubr.f32.gmra.mrb[6].mxu0 %v462_v61  ;;  %9479 = vst [vmem:[#allocation59_spill] sm:$0xff] %v7638_v30  ;;  %v790_v61 = vand.u32 4294901760, %v789_v37  ;;  %9481 = vst [vmem:[#allocation60_spill] sm:$0xff] %v7643_v51  ;;  %v531_v37 = vsub.f32 %v7587_v57, %v9484_v60  ;;  %v9177_v53 = vand.u32 4294901760, %v7618_v63  ;;  %v9170_v26 = vand.u32 4294901760, %v7643_v51  ;;  %v281_v60 = vld [vmem:[%s7247_s24 + $0xb0] sm:$0xff] }
  0xa0   : > { %v783_v29 = vand.u32 4294901760, %v782_v9  ;;  %v7632_v40 = vsub.f32 %v7316_v35, %v9476_v41  ;;  %5139 = vmatprep.mubr.f32.mxu0 %v472_v54  ;;  %6102 = vmatpush3.bf16.msra.mxu0 %v6099_v7  ;;  %v9482_v9 = vand.u32 4294901760, %v7574_v34  ;;  %v7649_v41 = vand.u32 4294901760, %v279_v13  ;;  %v282_v57 = vld [vmem:[%s7247_s24 + $0xb8] sm:$0xff] }
  0xa1   : > { %6104 = vmatprep.subr.bf16.mxu0 %v6103_v25  ;;  %v512_v2 = vand.u32 4294901760, %v511_v14  ;;  %v9486_v14 = vand.u32 4294901760, %v7608_v43 }
  0xa2   : > { %9477 = vst [vmem:[#allocation58_spill] sm:$0xff] %v7632_v40  ;;  %v521_v35 = vsub.f32 %v7574_v34, %v9482_v9  ;;  %9483 = vst [vmem:[#allocation61_spill] sm:$0xff] %v7649_v41  ;;  %v9169_v7 = vand.u32 4294901760, %v7632_v40  ;;  %v6107_v36 = vpack.c.bf16 %v790_v61, %v783_v29  ;;  %v502_v9 = vand.u32 4294901760, %v501_v4 }
  0xa3   : > { %5140 = vmatmul.mubr.f32.gmra.mrb[8].mxu0 %v482_v21  ;;  %v7660_v34 = vsub.f32 %v278_v58, %v7627_v1  ;;  %v7666_v61 = vand.u32 4294901760, %v280_v22  ;;  %v803_v21 = vsub.f32 %v7643_v51, %v9170_v26  ;;  %v7672_v58 = vsub.f32 %v279_v13, %v7649_v41  ;;  %v283_v41 = vld [vmem:[%s7247_s24 + $0xc0] sm:$0xff] }
  0xa4   : > { %v796_v23 = vsub.f32 %v7632_v40, %v9169_v7  ;;  %5142 = vmatprep.mubr.f32.mxu0 %v492_v19  ;;  %6106 = vmatpush3.bf16.msra.mxu0 %v6103_v25  ;;  %v522_v4 = vand.u32 4294901760, %v521_v35  ;;  %v532_v19 = vand.u32 4294901760, %v531_v37  ;;  %v541_v25 = vsub.f32 %v7608_v43, %v9486_v14 }
  0xa5   : > { %9485 = vst [vmem:[#allocation62_spill] sm:$0xff] %v7666_v61  ;;  %6108 = vmatprep.subr.bf16.mxu0 %v6107_v36  ;;  %v551_v29 = vsub.f32 %v7618_v63, %v9177_v53  ;;  %v804_v54 = vand.u32 4294901760, %v803_v21  ;;  %v9487_v26 = vand.u32 4294901760, %v7625_v62  ;;  %v9490_v14 = vand.u32 4294901760, %v7343_v50 }
  0xa6   : > { %v797_v7 = vand.u32 4294901760, %v796_v23  ;;  %v9488_v23 = vand.u32 4294901760, %v7341_v49  ;;  %v7701_v21 = vsub.f32 %v280_v22, %v7666_v61  ;;  %v7703_v53 = vand.u32 4294901760, %v281_v60 }
  0xa7   : > { %5143 = vmatmul.mubr.f32.gmra.mrb[10].mxu0 %v502_v9  ;;  %v561_v35 = vsub.f32 %v7625_v62, %v9487_v26  ;;  %v7695_v43 = vsub.f32 %v7343_v50, %v9490_v14  ;;  %v9492_v9 = vand.u32 4294901760, %v7638_v30  ;;  %v542_v14 = vand.u32 4294901760, %v541_v25 }
  0xa8   : > { %v7690_v37 = vsub.f32 %v7341_v49, %v9488_v23  ;;  %5145 = vmatprep.mubr.f32.mxu0 %v512_v2  ;;  %6110 = vmatpush3.bf16.msra.mxu0 %v6107_v36  ;;  %9493 = vst [vmem:[#allocation65_spill] sm:$0xff] %v7703_v53  ;;  %v6111_v13 = vpack.c.bf16 %v804_v54, %v797_v7  ;;  %v7708_v2 = vand.u32 4294901760, %v282_v57  ;;  %v7710_v62 = vand.u32 4294901760, %v283_v41  ;;  %v284_v36 = vld [vmem:[%s7247_s24 + $0xc8] sm:$0xff] }
  0xa9   : > { %9491 = vst [vmem:[#allocation64_spill] sm:$0xff] %v7695_v43  ;;  %v571_v26 = vsub.f32 %v7638_v30, %v9492_v9  ;;  %v9187_v50 = vand.u32 4294901760, %v7695_v43  ;;  %v552_v22 = vand.u32 4294901760, %v551_v29  ;;  %v562_v9 = vand.u32 4294901760, %v561_v35 }
  0xaa   : > { %9489 = vst [vmem:[#allocation63_spill] sm:$0xff] %v7690_v37  ;;  %v9184_v23 = vand.u32 4294901760, %v7690_v37  ;;  %9494 = vst [vmem:[#allocation66_spill] sm:$0xff] %v7708_v2  ;;  %6112 = vmatprep.subr.bf16.mxu0 %v6111_v13  ;;  %v9496_v49 = vand.u32 4294901760, %v7660_v34  ;;  %v7724_v29 = vsub.f32 %v281_v60, %v7703_v53  ;;  %v7738_v60 = vsub.f32 %v283_v41, %v7710_v62 }
  0xab   : > { %9495 = vst [vmem:[#allocation67_spill] sm:$0xff] %v7710_v62  ;;  %5146 = vmatmul.mubr.f32.gmra.mrb[12].mxu0 %v522_v4  ;;  %v817_v7 = vsub.f32 %v7695_v43, %v9187_v50  ;;  %v572_v25 = vand.u32 4294901760, %v571_v26  ;;  %v9498_v4 = vand.u32 4294901760, %v7672_v58  ;;  %v7735_v26 = vsub.f32 %v282_v57, %v7708_v2 }
  0xac   : > { %v810_v54 = vsub.f32 %v7690_v37, %v9184_v23  ;;  %5148 = vmatprep.mubr.f32.mxu0 %v532_v19  ;;  %v581_v30 = vsub.f32 %v7660_v34, %v9496_v49  ;;  %9497 = vst [vmem:[#allocation68_spill] sm:$0xff] %v7724_v29  ;;  %6114 = vmatpush3.bf16.msra.mxu0 %v6111_v13  ;;  %v285_v23 = vld [vmem:[%s7247_s24 + $0xd0] sm:$0xff]  ;;  %9500 = vst [vmem:[#allocation70_spill] sm:$0xff] %v7738_v60  ;;  %v7740_v13 = vand.u32 4294901760, %v284_v36 }
  0xad   : > { %v591_v35 = vsub.f32 %v7672_v58, %v9498_v4  ;;  %v818_v50 = vand.u32 4294901760, %v817_v7  ;;  %v7732_v19 = vpack.c.bf16 %v7355_v56, %v7353_v55  ;;  %9499 = vst [vmem:[#allocation69_spill] sm:$0xff] %v7735_v26  ;;  %v7744_v49 = vpack.c.bf16 %v7408_v32, %v7403_v31  ;;  %v286_v32 = vld [vmem:[%s7247_s24 + $0xd8] sm:$0xff] }
  0xae   : > { %v811_v61 = vand.u32 4294901760, %v810_v54  ;;  %9501 = vst [vmem:[#allocation71_spill] sm:$0xff] %v7740_v13  ;;  %v7748_v7 = vpack.c.bf16 %v7322_v39, %v7320_v38  ;;  %v7752_v4 = vpack.c.bf16 %v7457_v16, %v7452_v47  ;;  %v7756_v57 = vpack.c.bf16 %v7534_v18, %v7519_v6  ;;  %v290_v56 = vld [vmem:[%s7247_s24 + $0xf8] sm:$0xff] }
  0xaf   : > { %5149 = vmatmul.mubr.f32.gmra.mrb[14].mxu0 %v542_v14  ;;  %v7759_v63 = vand.u32 4294901760, %v285_v23  ;;  %v287_v14 = vld [vmem:[%s7247_s24 + $0xe0] sm:$0xff]  ;;  %v7773_v18 = vpack.c.bf16 %v7695_v43, %v7690_v37  ;;  %v7779_v6 = vsub.f32 %v284_v36, %v7740_v13  ;;  %v592_v43 = vand.u32 4294901760, %v591_v35 }
  0xb0   : > { %v6115_v54 = vpack.c.bf16 %v818_v50, %v811_v61  ;;  %5151 = vmatprep.mubr.f32.mxu0 %v552_v22  ;;  %v7764_v61 = vpack.c.bf16 %v7594_v42, %v7583_v0  ;;  %v7768_v50 = vpack.c.bf16 %v7643_v51, %v7632_v40  ;;  %v9503_v22 = vand.u32 4294901760, %v7701_v21 }
  0xb1   : > { %9502 = vst [vmem:[#allocation72_spill] sm:$0xff] %v7759_v63  ;;  %v582_v42 = vand.u32 4294901760, %v581_v30  ;;  %v7783_v0 = vand.u32 4294901760, %v286_v32  ;;  %v9505_v37 = vand.u32 4294901760, %v7724_v29  ;;  %v7790_v36 = vsub.f32 %v285_v23, %v7759_v63  ;;  %v288_v30 = vld [vmem:[%s7247_s24 + $0xe8] sm:$0xff] }
  0xb2   : > { %6116 = vmatprep.subr.bf16.mxu0 %v6115_v54  ;;  %v601_v41 = vsub.f32 %v7701_v21, %v9503_v22  ;;  %v9507_v16 = vand.u32 4294901760, %v7735_v26  ;;  %v9508_v35 = vand.u32 4294901760, %v7738_v60  ;;  %v7806_v47 = vand.u32 4294901760, %v288_v30 }
  0xb3   : > { %6118 = vmatpush3.bf16.msra.mxu0 %v6115_v54  ;;  %9504 = vst [vmem:[#allocation73_spill] sm:$0xff] %v7783_v0  ;;  %v611_v22 = vsub.f32 %v7724_v29, %v9505_v37  ;;  %v289_v54 = vld [vmem:[%s7247_s24 + $0xf0] sm:$0xff]  ;;  %v7804_v23 = vsub.f32 %v286_v32, %v7783_v0 }
  0xb4   : > { %5152 = vmatmul.mubr.f32.gmra.mrb[16].mxu0 %v562_v9  ;;  %6120 = vmatprep.subr.bf16.mxu0 %v7748_v7  ;;  %v7792_v9 = vand.u32 4294901760, %v287_v14  ;;  %v602_v51 = vand.u32 4294901760, %v601_v41  ;;  %v631_v37 = vsub.f32 %v7738_v60, %v9508_v35  ;;  %9509 = vst [vmem:[#allocation75_spill] sm:$0xff] %v7806_v47  ;;  %v9209_v41 = vand.u32 4294901760, %v7790_v36 }
  0xb5   : > { %5154 = vmatprep.mubr.f32.mxu0 %v572_v25  ;;  %v621_v25 = vsub.f32 %v7735_v26, %v9507_v16  ;;  %v612_v31 = vand.u32 4294901760, %v611_v22  ;;  %v9511_v16 = vand.u32 4294901760, %v7779_v6  ;;  %v9208_v32 = vand.u32 4294901760, %v7804_v23 }
  0xb6   : > { %9506 = vst [vmem:[#allocation74_spill] sm:$0xff] %v7792_v9  ;;  %v7810_v40 = vsub.f32 %v287_v14, %v7792_v9  ;;  %v7820_v60 = vsub.f32 %v288_v30, %v7806_v47  ;;  %v632_v22 = vand.u32 4294901760, %v631_v37  ;;  %v651_v14 = vsub.f32 %v7790_v36, %v9209_v41 }
  0xb7   : > { %v641_v55 = vsub.f32 %v7779_v6, %v9511_v16  ;;  %v622_v35 = vand.u32 4294901760, %v621_v25  ;;  %v661_v30 = vsub.f32 %v7804_v23, %v9208_v32 }
  0xb8   : > { %5155 = vmatmul.mubr.f32.gmra.mrb[18].mxu0 %v582_v42  ;;  %v7812_v42 = vand.u32 4294901760, %v289_v54  ;;  %v9213_v26 = vand.u32 4294901760, %v7810_v40  ;;  %v9212_v25 = vand.u32 4294901760, %v7820_v60  ;;  %v652_v37 = vand.u32 4294901760, %v651_v14 }
  0xb9   : > { %5157 = vmatprep.mubr.f32.mxu0 %v592_v43  ;;  %v7822_v43 = vand.u32 4294901760, %v290_v56 }
  0xba   : > { %9510 = vst [vmem:[#allocation76_spill] sm:$0xff] %v7812_v42  ;;  %v7829_v29 = vsub.f32 %v289_v54, %v7812_v42  ;;  %v671_v16 = vsub.f32 %v7810_v40, %v9213_v26  ;;  %v9534_v26 = vld [vmem:[#allocation26_spill] sm:$0xff] }
  0xbb   : > { %9512 = vst [vmem:[#allocation77_spill] sm:$0xff] %v7822_v43 }
  0xbc   : > { %5158 = vmatmul.mubr.f32.gmra.mrb[20].mxu0 %v602_v51  ;;  %v642_v51 = vand.u32 4294901760, %v641_v55  ;;  %v9211_v54 = vand.u32 4294901760, %v7829_v29  ;;  %v681_v55 = vsub.f32 %v7820_v60, %v9212_v25  ;;  %v672_v41 = vand.u32 4294901760, %v671_v16  ;;  %v9523_v16 = vld [vmem:[#allocation28_spill] sm:$0xff]  ;;  %v9533_v25 = vld [vmem:[#allocation45_spill] sm:$0xff] }
  0xbd   : > { %5160 = vmatprep.mubr.f32.mxu0 %v612_v31  ;;  %v7836_v31 = vsub.f32 %v290_v56, %v7822_v43 }
  0xbe   : > { %v691_v56 = vsub.f32 %v7829_v29, %v9211_v54  ;;  %v9532_v54 = vld [vmem:[#allocation43_spill] sm:$0xff] }
  0xbf   : > { %v9210_v32 = vand.u32 4294901760, %v7836_v31 }
  0xc0   : > { %5161 = vmatmul.mubr.f32.gmra.mrb[22].mxu0 %v622_v35  ;;  %v662_v35 = vand.u32 4294901760, %v661_v30 }
  0xc1   : > { %5163 = vmatprep.mubr.f32.mxu0 %v632_v22  ;;  %v682_v22 = vand.u32 4294901760, %v681_v55  ;;  %v701_v14 = vsub.f32 %v7836_v31, %v9210_v32  ;;  %v9525_v55 = vld [vmem:[#allocation18_spill] sm:$0xff]  ;;  %v9531_v32 = vld [vmem:[#allocation23_spill] sm:$0xff] }
  0xc3   : > { %v702_v30 = vand.u32 4294901760, %v701_v14  ;;  %v9528_v14 = vld [vmem:[#allocation19_spill] sm:$0xff] }
  0xc4   : > { %5164 = vmatmul.mubr.f32.gmra.mrb[24].mxu0 %v642_v51  ;;  %v692_v51 = vand.u32 4294901760, %v691_v56  ;;  %v9526_v56 = vld [vmem:[#allocation35_spill] sm:$0xff] }
  0xc5   : > { %5166 = vmatprep.mubr.f32.mxu0 %v652_v37  ;;  %v9522_v37 = vld [vmem:[#allocation16_spill] sm:$0xff] }
  0xc8   : > { %5167 = vmatmul.mubr.f32.gmra.mrb[26].mxu0 %v662_v35  ;;  %v9524_v35 = vld [vmem:[#allocation34_spill] sm:$0xff] }
  0xc9   : > { %5169 = vmatprep.mubr.f32.mxu0 %v672_v41  ;;  %v9521_v41 = vld [vmem:[#allocation27_spill] sm:$0xff] }
  0xcc   : > { %5170 = vmatmul.mubr.f32.gmra.mrb[28].mxu0 %v682_v22  ;;  %v9527_v22 = vld [vmem:[#allocation36_spill] sm:$0xff] }
  0xcd   : > { %5172 = vmatprep.mubr.f32.mxu0 %v692_v51  ;;  %v9529_v51 = vld [vmem:[#allocation37_spill] sm:$0xff] }
  0xd0   : > { %5173 = vmatmul.mubr.f32.gmra.mrb[30].mxu0 %v702_v30  ;;  %v9530_v30 = vld [vmem:[#allocation38_spill] sm:$0xff] }
  0xd1   : > { %5207 = vmatprep.mubr.f32.mxu0 %v7274_v17 }
  0xd4   : > { %5208 = vmatmul.mubr.f32.vlgmr.msra.gmra.mrb[0].mxu0 %v7312_v33 }
  0xd5   : > { %6122 = vmatpush3.bf16.msra.mxu0 %v7748_v7  ;;  %5210 = vmatprep.mubr.f32.mxu0 %v7334_v44  ;;  %v9515_v7 = vld [vmem:[#allocation62_spill] sm:$0xff] }
  0xd6   : > { %6124 = vmatprep.subr.bf16.mxu0 %v7732_v19 }
  0xd8   : > { %5211 = vmatmul.mubr.f32.gmra.mrb[2].mxu0 %v7336_v45 }
  0xd9   : > { %5213 = vmatprep.mubr.f32.mxu0 %v7348_v52  ;;  %6126 = vmatpush3.bf16.msra.mxu0 %v7732_v19  ;;  %v9513_v19 = vld [vmem:[#allocation53_spill] sm:$0xff] }
  0xda   : > { %6128 = vmatprep.subr.bf16.mxu0 %v7744_v49 }
  0xdc   : > { %5214 = vmatmul.mubr.f32.gmra.mrb[4].mxu0 %v7367_v59 }
  0xdd   : > { %5216 = vmatprep.mubr.f32.mxu0 %v7421_v11  ;;  %6130 = vmatpush3.bf16.msra.mxu0 %v7744_v49  ;;  %v9514_v49 = vld [vmem:[#allocation61_spill] sm:$0xff] }
  0xde   : > { %6132 = vmatprep.subr.bf16.mxu0 %v7752_v4 }
  0xe0   : > { %5217 = vmatmul.mubr.f32.gmra.mrb[6].mxu0 %v7423_v46 }
  0xe1   : > { %5219 = vmatprep.mubr.f32.mxu0 %v7447_v5  ;;  %6134 = vmatpush3.bf16.msra.mxu0 %v7752_v4  ;;  %v9517_v4 = vld [vmem:[#allocation20_spill] sm:$0xff] }
  0xe2   : > { %6136 = vmatprep.subr.bf16.mxu0 %v7756_v57 }
  0xe4   : > { %5220 = vmatmul.mubr.f32.gmra.mrb[8].mxu0 %v7470_v28 }
  0xe5   : > { %5222 = vmatprep.mubr.f32.mxu0 %v7473_v20  ;;  %6138 = vmatpush3.bf16.msra.mxu0 %v7756_v57  ;;  %v9518_v57 = vld [vmem:[#allocation24_spill] sm:$0xff] }
  0xe6   : > { %6140 = vmatprep.subr.bf16.mxu0 %v7764_v61 }
  0xe8   : > { %5223 = vmatmul.mubr.f32.gmra.mrb[10].mxu0 %v7514_v48 }
  0xe9   : > { %5225 = vmatprep.mubr.f32.mxu0 %v7537_v24  ;;  %6142 = vmatpush3.bf16.msra.mxu0 %v7764_v61  ;;  %v9519_v61 = vld [vmem:[#allocation15_spill] sm:$0xff] }
  0xea   : > { %6144 = vmatprep.subr.bf16.mxu0 %v7768_v50 }
  0xec   : > { %5226 = vmatmul.mubr.f32.gmra.mrb[12].mxu0 %v7539_v15  ;;  %v9556_v15 = vld [vmem:[#allocation30_spill] sm:$0xff] }
  0xed   : > { %5228 = vmatprep.mubr.f32.mxu0 %v7550_v12  ;;  %6146 = vmatpush3.bf16.msra.mxu0 %v7768_v50  ;;  %v9520_v50 = vld [vmem:[#allocation25_spill] sm:$0xff] }
  0xee   : > { %6148 = vmatprep.subr.bf16.mxu0 %v7773_v18 }
  0xf0   : > { %5229 = vmatmul.mubr.f32.gmra.mrb[14].mxu0 %v7576_v8  ;;  %v9553_v8 = vand.u32 4294901760, %v9518_v57 }
  0xf1   : > { %5231 = vmatprep.mubr.f32.mxu0 %v7589_v3  ;;  %6150 = vmatpush3.bf16.msra.mxu0 %v7773_v18  ;;  %v9516_v18 = vld [vmem:[#allocation17_spill] sm:$0xff]  ;;  %v9552_v3 = vand.u32 4294901760, %v9517_v4 }
  0xf2   : > { %6152 = vmatprep.subr.bf16.mxu0 %v7261_v10 }
  0xf4   : > { %5232 = vmatmul.mubr.f32.gmra.mrb[16].mxu0 %v7597_v27 }
  0xf5   : > { %5234 = vmatprep.mubr.f32.mxu0 %v9513_v19 }
  0xf8   : > { %5235 = vmatmul.mubr.f32.gmra.mrb[18].mxu0 %v7627_v1  ;;  %v9550_v1 = vld [vmem:[#allocation22_spill] sm:$0xff] }
  0xf9   : > { %5237 = vmatprep.mubr.f32.mxu0 %v9514_v49  ;;  %v9551_v19 = vand.u32 4294901760, %v9550_v1  ;;  %v9560_v1 = vld [vmem:[#allocation32_spill] sm:$0xff] }
  0xfc   : > { %5238 = vmatmul.mubr.f32.gmra.mrb[20].mxu0 %v9515_v7  ;;  %v9548_v7 = vld [vmem:[#allocation21_spill] sm:$0xff] }
  0xfd   : > { %5240 = vmatprep.mubr.f32.mxu0 %v7703_v53  ;;  %v9543_v53 = vld [vmem:[#allocation59_spill] sm:$0xff]  ;;  %v9549_v49 = vand.u32 4294901760, %v9548_v7  ;;  %v9559_v7 = vand.u32 4294901760, %v9521_v41 }
  0xff   : > { %v6187_v27 = vpack.c.bf16 %v9551_v19, %v9549_v49 }
 0x100   : > { %5241 = vmatmul.mubr.f32.gmra.mrb[22].mxu0 %v7708_v2  ;;  %v9542_v2 = vld [vmem:[#allocation56_spill] sm:$0xff] }
 0x101   : > { %5243 = vmatprep.mubr.f32.mxu0 %v7710_v62  ;;  %v9541_v62 = vld [vmem:[#allocation55_spill] sm:$0xff] }
 0x104   : > { %5244 = vmatmul.mubr.f32.gmra.mrb[24].mxu0 %v7740_v13  ;;  %v9540_v13 = vld [vmem:[#allocation54_spill] sm:$0xff] }
 0x105   : > { %5246 = vmatprep.mubr.f32.mxu0 %v7759_v63 }
 0x108   : > { %5247 = vmatmul.mubr.f32.gmra.mrb[26].mxu0 %v7783_v0  ;;  %v9539_v0 = vand.u32 4294901760, %v7322_v39  ;;  %v9545_v39 = vld [vmem:[#allocation69_spill] sm:$0xff] }
 0x109   : > { %5249 = vmatprep.mubr.f32.mxu0 %v7792_v9  ;;  %v9538_v9 = vand.u32 4294901760, %v7320_v38  ;;  %v9544_v38 = vld [vmem:[#allocation68_spill] sm:$0xff] }
 0x10b   : > { %v6183_v63 = vpack.c.bf16 %v9539_v0, %v9538_v9  ;;  %v9546_v0 = vld [vmem:[#allocation70_spill] sm:$0xff]  ;;  %v9547_v9 = vand.u32 4294901760, %v9516_v18 }
 0x10c   : > { %5250 = vmatmul.mubr.f32.gmra.mrb[28].mxu0 %v7806_v47  ;;  %v9537_v47 = vld [vmem:[#allocation31_spill] sm:$0xff] }
 0x10d   : > { %5252 = vmatprep.mubr.f32.mxu0 %v7812_v42  ;;  %v9536_v42 = vld [vmem:[#allocation49_spill] sm:$0xff] }
 0x110   : > { %5253 = vmatmul.mubr.f32.gmra.mrb[30].mxu0 %v7822_v43  ;;  %v9535_v43 = vld [vmem:[#allocation46_spill] sm:$0xff] }
 0x111   : > { %5287 = vmatprep.mubr.f32.mxu0 %v9516_v18  ;;  %v9558_v18 = vand.u32 4294901760, %v9520_v50 }
 0x114   : > { %5288 = vmatmul.mubr.f32.vlgmr.msra.gmra.mrb[0].mxu0 %v9517_v4 }
 0x115   : > { %6154 = vmatpush3.bf16.msra.mxu0 %v7261_v10  ;;  %5290 = vmatprep.mubr.f32.mxu0 %v9518_v57 }
 0x116   : > { %6156 = vmatprep.subr.bf16.mxu0 %v9519_v61 }
 0x118   : > { %5291 = vmatmul.mubr.f32.gmra.mrb[2].mxu0 %v9520_v50  ;;  %v9571_v50 = vand.u32 4294901760, %v9527_v22 }
 0x119   : > { %5293 = vmatprep.mubr.f32.mxu0 %v9521_v41  ;;  %6158 = vmatpush3.bf16.msra.mxu0 %v9519_v61  ;;  %v9572_v41 = vld [vmem:[#allocation48_spill] sm:$0xff] }
 0x11a   : > { %6160 = vmatprep.subr.bf16.mxu0 %v9522_v37 }
 0x11c   : > { %5294 = vmatmul.mubr.f32.gmra.mrb[4].mxu0 %v9523_v16 }
 0x11d   : > { %5296 = vmatprep.mubr.f32.mxu0 %v9524_v35  ;;  %6162 = vmatpush3.bf16.msra.mxu0 %v9522_v37 }
 0x11e   : > { %6164 = vmatprep.subr.bf16.mxu0 %v9525_v55 }
 0x120   : > { %5297 = vmatmul.mubr.f32.gmra.mrb[6].mxu0 %v9526_v56 }
 0x121   : > { %5299 = vmatprep.mubr.f32.mxu0 %v9527_v22  ;;  %6166 = vmatpush3.bf16.msra.mxu0 %v9525_v55 }
 0x122   : > { %6168 = vmatprep.subr.bf16.mxu0 %v9528_v14 }
 0x124   : > { %5300 = vmatmul.mubr.f32.gmra.mrb[8].mxu0 %v9529_v51 }
 0x125   : > { %5302 = vmatprep.mubr.f32.mxu0 %v9530_v30  ;;  %6170 = vmatpush3.bf16.msra.mxu0 %v9528_v14 }
 0x126   : > { %6172 = vmatprep.subr.bf16.mxu0 %v9531_v32 }
 0x128   : > { %5303 = vmatmul.mubr.f32.gmra.mrb[10].mxu0 %v9532_v54 }
 0x129   : > { %5305 = vmatprep.mubr.f32.mxu0 %v9533_v25  ;;  %6174 = vmatpush3.bf16.msra.mxu0 %v9531_v32 }
 0x12a   : > { %6176 = vmatprep.subr.bf16.mxu0 %v9534_v26 }
 0x12c   : > { %5306 = vmatmul.mubr.f32.gmra.mrb[12].mxu0 %v9535_v43 }
 0x12d   : > { %5308 = vmatprep.mubr.f32.mxu0 %v9536_v42  ;;  %6178 = vmatpush3.bf16.msra.mxu0 %v9534_v26  ;;  %v9557_v26 = vand.u32 4294901760, %v9556_v15  ;;  %v9566_v15 = vld [vmem:[#allocation39_spill] sm:$0xff] }
 0x12e   : > { %6180 = vmatprep.subr.bf16.mxu0 %v9537_v47 }
 0x130   : > { %5309 = vmatmul.mubr.f32.gmra.mrb[14].mxu0 %v9540_v13 }
 0x131   : > { %5311 = vmatprep.mubr.f32.mxu0 %v9541_v62  ;;  %6182 = vmatpush3.bf16.msra.mxu0 %v9537_v47  ;;  %v9554_v47 = vld [vmem:[#allocation29_spill] sm:$0xff] }
 0x132   : > { %6184 = vmatprep.subr.bf16.mxu0 %v6183_v63  ;;  %v9555_v12 = vand.u32 4294901760, %v9554_v47  ;;  %v9565_v47 = vand.u32 4294901760, %v9524_v35 }
 0x134   : > { %5312 = vmatmul.mubr.f32.gmra.mrb[16].mxu0 %v9542_v2  ;;  %v6191_v24 = vpack.c.bf16 %v9557_v26, %v9555_v12  ;;  %v9567_v12 = vand.u32 4294901760, %v9566_v15  ;;  %v9568_v26 = vld [vmem:[#allocation40_spill] sm:$0xff] }
 0x135   : > { %5314 = vmatprep.mubr.f32.mxu0 %v9543_v53  ;;  %v9569_v4 = vand.u32 4294901760, %v9568_v26  ;;  %v9589_v26 = vand.u32 4294901760, %v9536_v42  ;;  %v9594_v42 = vand.u32 4294901760, %v7660_v34 }
 0x137   : > { %v6199_v57 = vpack.c.bf16 %v9569_v4, %v9567_v12  ;;  %v9588_v12 = vand.u32 4294901760, %v9535_v43  ;;  %v9592_v4 = vand.u32 4294901760, %v9542_v2  ;;  %v9593_v43 = vand.u32 4294901760, %v9543_v53 }
 0x138   : > { %5315 = vmatmul.mubr.f32.gmra.mrb[18].mxu0 %v7660_v34  ;;  %v9599_v2 = vand.u32 4294901760, %v9546_v0  ;;  %v9600_v53 = vand.u32 4294901760, %v7779_v6  ;;  %v9601_v34 = vand.u32 4294901760, %v7790_v36 }
 0x139   : > { %5317 = vmatprep.mubr.f32.mxu0 %v7672_v58 }
 0x13c   : > { %5318 = vmatmul.mubr.f32.gmra.mrb[20].mxu0 %v7701_v21 }
 0x13d   : > { %5320 = vmatprep.mubr.f32.mxu0 %v9544_v38 }
 0x140   : > { %5321 = vmatmul.mubr.f32.gmra.mrb[22].mxu0 %v9545_v39 }
 0x141   : > { %5323 = vmatprep.mubr.f32.mxu0 %v9546_v0  ;;  %v9606_v0 = vand.u32 4294901760, %v7836_v31 }
 0x144   : > { %5324 = vmatmul.mubr.f32.gmra.mrb[24].mxu0 %v7779_v6  ;;  %v8044_v6 = vld [vmem:[#allocation7] sm:$0xff] }
 0x145   : > { %5326 = vmatprep.mubr.f32.mxu0 %v7790_v36  ;;  %v8048_v36 = vld [vmem:[#allocation7 + $0x10] sm:$0xff] }
 0x148   : > { %5327 = vmatmul.mubr.f32.gmra.mrb[26].mxu0 %v7804_v23 }
 0x149   : > { %5329 = vmatprep.mubr.f32.mxu0 %v7810_v40 }
 0x14c   : > { %5330 = vmatmul.mubr.f32.gmra.mrb[28].mxu0 %v7820_v60 }
 0x14d   : > { %5332 = vmatprep.mubr.f32.mxu0 %v7829_v29 }
 0x150   : > { %5333 = vmatmul.mubr.f32.gmra.mrb[30].mxu0 %v7836_v31  ;;  %v8058_v31 = vld [vmem:[#allocation7 + $0x28] sm:$0xff] }
 0x151   : > { %5367 = vmatprep.mubr.f32.mxu0 %v9547_v9  ;;  %v9574_v9 = vld [vmem:[#allocation51_spill] sm:$0xff] }
 0x152   : > { %v9575_v35 = vand.u32 4294901760, %v9574_v9 }
 0x154   : > { %5368 = vmatmul.mubr.f32.vlgmr.msra.gmra.mrb[0].mxu0 %v9552_v3  ;;  %v9561_v3 = vand.u32 4294901760, %v9560_v1 }
 0x155   : > { %6186 = vmatpush3.bf16.msra.mxu0 %v6183_v63  ;;  %5370 = vmatprep.mubr.f32.mxu0 %v9553_v8  ;;  %v9562_v63 = vld [vmem:[#allocation33_spill] sm:$0xff]  ;;  %v9564_v8 = vand.u32 4294901760, %v9523_v16  ;;  %v9573_v16 = vand.u32 4294901760, %v9572_v41  ;;  %v8056_v41 = vld [vmem:[#allocation7 + $0x20] sm:$0xff] }
 0x156   : > { %6188 = vmatprep.subr.bf16.mxu0 %v6187_v27  ;;  %v9563_v19 = vand.u32 4294901760, %v9562_v63 }
 0x158   : > { %5371 = vmatmul.mubr.f32.gmra.mrb[2].mxu0 %v9558_v18  ;;  %v6195_v49 = vpack.c.bf16 %v9563_v19, %v9561_v3  ;;  %v6203_v18 = vpack.c.bf16 %v9575_v35, %v9573_v16  ;;  %v9580_v3 = vld [vmem:[#allocation60_spill] sm:$0xff]  ;;  %v9582_v19 = vand.u32 4294901760, %v9532_v54  ;;  %v9590_v54 = vand.u32 4294901760, %v9540_v13 }
 0x159   : > { %5373 = vmatprep.mubr.f32.mxu0 %v9559_v7  ;;  %6190 = vmatpush3.bf16.msra.mxu0 %v6187_v27  ;;  %v9570_v27 = vand.u32 4294901760, %v9526_v56  ;;  %v9577_v7 = vand.u32 4294901760, %v9530_v30  ;;  %v9578_v56 = vld [vmem:[#allocation58_spill] sm:$0xff]  ;;  %v9581_v22 = vand.u32 4294901760, %v9580_v3  ;;  %v9596_v13 = vand.u32 4294901760, %v7701_v21 }
 0x15a   : > { %6192 = vmatprep.subr.bf16.mxu0 %v6191_v24  ;;  %v9579_v1 = vand.u32 4294901760, %v9578_v56  ;;  %v9603_v21 = vand.u32 4294901760, %v7810_v40  ;;  %v2330_v40 = vand.u32 4294901760, %v8044_v6  ;;  %v8080_v56 = vld [vmem:[#allocation7 + $0x38] sm:$0xff] }
 0x15b   : > { %v2351_v3 = vand.u32 4294901760, %v8080_v56 }
 0x15c   : > { %5374 = vmatmul.mubr.f32.gmra.mrb[4].mxu0 %v9564_v8  ;;  %v6207_v63 = vpack.c.bf16 %v9581_v22, %v9579_v1  ;;  %v8097_v22 = vld [vmem:[#allocation7 + $0x40] sm:$0xff] }
 0x15d   : > { %5376 = vmatprep.mubr.f32.mxu0 %v9565_v47  ;;  %6194 = vmatpush3.bf16.msra.mxu0 %v6191_v24  ;;  %v9576_v24 = vand.u32 4294901760, %v9529_v51  ;;  %v9584_v51 = vld [vmem:[#allocation63_spill] sm:$0xff]  ;;  %v9586_v47 = vld [vmem:[#allocation64_spill] sm:$0xff] }
 0x15e   : > { %6196 = vmatprep.subr.bf16.mxu0 %v6195_v49  ;;  %v9585_v8 = vand.u32 4294901760, %v9584_v51  ;;  %v9587_v30 = vand.u32 4294901760, %v9586_v47  ;;  %v9613_v47 = vld [vmem:[#allocation44_spill] sm:$0xff] }
 0x160   : > { %5377 = vmatmul.mubr.f32.gmra.mrb[6].mxu0 %v9570_v27  ;;  %v6211_v15 = vpack.c.bf16 %v9587_v30, %v9585_v8  ;;  %v9598_v27 = vand.u32 4294901760, %v9545_v39  ;;  %v9605_v39 = vand.u32 4294901760, %v7829_v29  ;;  %v2336_v29 = vand.u32 4294901760, %v8048_v36  ;;  %v9612_v8 = vld [vmem:[#allocation42_spill] sm:$0xff]  ;;  %v9614_v30 = vld [vmem:[#allocation31_spill] sm:$0xff] }
 0x161   : > { %5379 = vmatprep.mubr.f32.mxu0 %v9571_v50  ;;  %6198 = vmatpush3.bf16.msra.mxu0 %v6195_v49  ;;  %v9583_v49 = vand.u32 4294901760, %v9533_v25  ;;  %v9591_v25 = vand.u32 4294901760, %v9541_v62  ;;  %v9597_v62 = vand.u32 4294901760, %v9544_v38  ;;  %v9604_v38 = vand.u32 4294901760, %v7820_v60  ;;  %v8046_v50 = vld [vmem:[#allocation7 + $0x8] sm:$0xff]  ;;  %v8053_v60 = vld [vmem:[#allocation7 + $0x18] sm:$0xff] }
 0x162   : > { %6200 = vmatprep.subr.bf16.mxu0 %v6199_v57  ;;  %v2339_v16 = vand.u32 4294901760, %v8053_v60 }
 0x164   : > { %5380 = vmatmul.mubr.f32.gmra.mrb[8].mxu0 %v9576_v24  ;;  %v8072_v35 = vpack.c.bf16 %v2339_v16, %v2336_v29  ;;  %v2345_v24 = vand.u32 4294901760, %v8058_v31 }
 0x165   : > { %5382 = vmatprep.mubr.f32.mxu0 %v9577_v7  ;;  %6202 = vmatpush3.bf16.msra.mxu0 %v6199_v57  ;;  %v9595_v57 = vand.u32 4294901760, %v7672_v58  ;;  %v9602_v58 = vand.u32 4294901760, %v7804_v23  ;;  %v2333_v23 = vand.u32 4294901760, %v8046_v50  ;;  %v8078_v7 = vld [vmem:[#allocation7 + $0x30] sm:$0xff] }
 0x166   : > { %6204 = vmatprep.subr.bf16.mxu0 %v6203_v18  ;;  %v2348_v1 = vand.u32 4294901760, %v8078_v7 }
 0x167   : > { %v8065_v9 = vpack.c.bf16 %v2333_v23, %v2330_v40 }
 0x168   : > { %5383 = vmatmul.mubr.f32.gmra.mrb[10].mxu0 %v9582_v19  ;;  %v8109_v19 = vpack.c.bf16 %v2351_v3, %v2348_v1 }
 0x169   : > { %5385 = vmatprep.mubr.f32.mxu0 %v9583_v49  ;;  %6206 = vmatpush3.bf16.msra.mxu0 %v6203_v18  ;;  %v2342_v18 = vand.u32 4294901760, %v8056_v41 }
 0x16a   : > { %6208 = vmatprep.subr.bf16.mxu0 %v6207_v63  ;;  %6248 = vmatprep.subr.bf16.mxu1 %v8065_v9  ;;  %9608 = vst [vmem:[#allocation20_spill] sm:$0xff] %v8109_v19 }
 0x16b   : > { %6250 = vmatpush3.bf16.msra.mxu1 %v8065_v9 }
 0x16c   : > { %5386 = vmatmul.mubr.f32.gmra.mrb[12].mxu0 %v9588_v12  ;;  %6252 = vmatprep.subr.bf16.mxu1 %v8072_v35  ;;  %v9617_v12 = vld [vmem:[#allocation52_spill] sm:$0xff] }
 0x16d   : > { %5388 = vmatprep.mubr.f32.mxu0 %v9589_v26  ;;  %6210 = vmatpush3.bf16.msra.mxu0 %v6207_v63  ;;  %v8099_v63 = vld [vmem:[#allocation7 + $0x48] sm:$0xff]  ;;  %v9618_v26 = vld [vmem:[#allocation53_spill] sm:$0xff] }
 0x16e   : > { %6212 = vmatprep.subr.bf16.mxu0 %v6211_v15  ;;  %v2357_v49 = vand.u32 4294901760, %v8099_v63 }
 0x16f   : > { %6254 = vmatpush3.bf16.msra.mxu1 %v8072_v35 }
 0x170   : > { %5389 = vmatmul.mubr.f32.gmra.mrb[14].mxu0 %v9590_v54  ;;  %v9620_v54 = vld [vmem:[#allocation61_spill] sm:$0xff] }
 0x171   : > { %5391 = vmatprep.mubr.f32.mxu0 %v9591_v25  ;;  %6214 = vmatpush3.bf16.msra.mxu0 %v6211_v15  ;;  %v9616_v15 = vld [vmem:[#allocation50_spill] sm:$0xff] }
 0x172   : > { %6216 = vmatprep.subr.bf16.mxu0 %v7261_v10  ;;  %v9621_v25 = vld [vmem:[#allocation62_spill] sm:$0xff] }
 0x174   : > { %5392 = vmatmul.mubr.f32.gmra.mrb[16].mxu0 %v9592_v4  ;;  %v9622_v4 = vld [vmem:[#allocation65_spill] sm:$0xff] }
 0x175   : > { %5394 = vmatprep.mubr.f32.mxu0 %v9593_v43  ;;  %v9623_v43 = vld [vmem:[#allocation66_spill] sm:$0xff] }
 0x178   : > { %5395 = vmatmul.mubr.f32.gmra.mrb[18].mxu0 %v9594_v42  ;;  %v9624_v42 = vld [vmem:[#allocation67_spill] sm:$0xff] }
 0x179   : > { %5397 = vmatprep.mubr.f32.mxu0 %v9595_v57  ;;  %v9625_v57 = vld [vmem:[#allocation71_spill] sm:$0xff] }
 0x17c   : > { %5398 = vmatmul.mubr.f32.gmra.mrb[20].mxu0 %v9596_v13  ;;  %v9626_v13 = vld [vmem:[#allocation72_spill] sm:$0xff] }
 0x17d   : > { %5400 = vmatprep.mubr.f32.mxu0 %v9597_v62  ;;  %v9627_v62 = vld [vmem:[#allocation73_spill] sm:$0xff] }
 0x180   : > { %5401 = vmatmul.mubr.f32.gmra.mrb[22].mxu0 %v9598_v27  ;;  %v9628_v27 = vld [vmem:[#allocation74_spill] sm:$0xff] }
 0x181   : > { %5403 = vmatprep.mubr.f32.mxu0 %v9599_v2  ;;  %v9629_v2 = vld [vmem:[#allocation75_spill] sm:$0xff] }
 0x184   : > { %5404 = vmatmul.mubr.f32.gmra.mrb[24].mxu0 %v9600_v53  ;;  %v9630_v53 = vld [vmem:[#allocation76_spill] sm:$0xff] }
 0x185   : > { %5406 = vmatprep.mubr.f32.mxu0 %v9601_v34  ;;  %v9631_v34 = vld [vmem:[#allocation77_spill] sm:$0xff] }
 0x188   : > { %5407 = vmatmul.mubr.f32.gmra.mrb[26].mxu0 %v9602_v58 }
 0x189   : > { %5409 = vmatprep.mubr.f32.mxu0 %v9603_v21 }
 0x18c   : > { %5410 = vmatmul.mubr.f32.gmra.mrb[28].mxu0 %v9604_v38 }
 0x18d   : > { %5412 = vmatprep.mubr.f32.mxu0 %v9605_v39  ;;  %v8208_v39 = vsub.f32 %v8044_v6, %v2330_v40 }
 0x18f   : > { %9635 = vst [vmem:[#allocation16_spill] sm:$0xff] %v8208_v39 }
 0x190   : > { %5413 = vmatmul.mubr.f32.gmra.mrb[30].mxu0 %v9606_v0  ;;  %v8213_v0 = vsub.f32 %v8046_v50, %v2333_v23 }
 0x191   : > { %5447 = vmatprep.mubr.f32.mxu0 %v7274_v17 }
 0x192   : > { %9636 = vst [vmem:[#allocation28_spill] sm:$0xff] %v8213_v0 }
 0x194   : > { %5448 = vmatmul.mubr.f32.vlgmr.msra.gmra.mrb[0].mxu0 %v7312_v33 }
 0x195   : > { %6218 = vmatpush3.bf16.msra.mxu0 %v7261_v10  ;;  %5450 = vmatprep.mubr.f32.mxu0 %v7334_v44  ;;  %v8091_v10 = vpack.c.bf16 %v2345_v24, %v2342_v18 }
 0x196   : > { %6220 = vmatprep.subr.bf16.mxu0 %v9519_v61 }
 0x197   : > { %9607 = vst [vmem:[#allocation17_spill] sm:$0xff] %v8091_v10  ;;  %6256 = vmatprep.subr.bf16.mxu1 %v8091_v10 }
 0x198   : > { %5451 = vmatmul.mubr.f32.gmra.mrb[2].mxu0 %v7336_v45  ;;  %6258 = vmatpush3.bf16.msra.mxu1 %v8091_v10 }
 0x199   : > { %5453 = vmatprep.mubr.f32.mxu0 %v7348_v52  ;;  %6222 = vmatpush3.bf16.msra.mxu0 %v9519_v61  ;;  %v2354_v61 = vand.u32 4294901760, %v8097_v22 }
 0x19a   : > { %6224 = vmatprep.subr.bf16.mxu0 %v9522_v37  ;;  %6260 = vmatprep.subr.bf16.mxu1 %v8109_v19 }
 0x19b   : > { %v8123_v51 = vpack.c.bf16 %v2357_v49, %v2354_v61 }
 0x19c   : > { %5454 = vmatmul.mubr.f32.gmra.mrb[4].mxu0 %v7367_v59  ;;  %6262 = vmatpush3.bf16.msra.mxu1 %v8109_v19 }
 0x19d   : > { %5456 = vmatprep.mubr.f32.mxu0 %v7421_v11  ;;  %6226 = vmatpush3.bf16.msra.mxu0 %v9522_v37  ;;  %9609 = vst [vmem:[#allocation24_spill] sm:$0xff] %v8123_v51  ;;  %v9610_v37 = vld [vmem:[#allocation41_spill] sm:$0xff] }
 0x19e   : > { %6228 = vmatprep.subr.bf16.mxu0 %v9525_v55  ;;  %6264 = vmatprep.subr.bf16.mxu1 %v8123_v51 }
 0x1a0   : > { %5457 = vmatmul.mubr.f32.gmra.mrb[6].mxu0 %v7423_v46  ;;  %6266 = vmatpush3.bf16.msra.mxu1 %v8123_v51 }
 0x1a1   : > { %5459 = vmatprep.mubr.f32.mxu0 %v7447_v5  ;;  %6230 = vmatpush3.bf16.msra.mxu0 %v9525_v55  ;;  %v9611_v55 = vld [vmem:[#allocation26_spill] sm:$0xff] }
 0x1a2   : > { %6232 = vmatprep.subr.bf16.mxu0 %v9528_v14 }
 0x1a4   : > { %5460 = vmatmul.mubr.f32.gmra.mrb[8].mxu0 %v7470_v28 }
 0x1a5   : > { %5462 = vmatprep.mubr.f32.mxu0 %v7473_v20  ;;  %6234 = vmatpush3.bf16.msra.mxu0 %v9528_v14  ;;  %v9615_v14 = vld [vmem:[#allocation47_spill] sm:$0xff] }
 0x1a6   : > { %6236 = vmatprep.subr.bf16.mxu0 %v9531_v32 }
 0x1a8   : > { %5463 = vmatmul.mubr.f32.gmra.mrb[10].mxu0 %v7514_v48 }
 0x1a9   : > { %5465 = vmatprep.mubr.f32.mxu0 %v9610_v37  ;;  %6238 = vmatpush3.bf16.msra.mxu0 %v9531_v32  ;;  %v9619_v32 = vld [vmem:[#allocation57_spill] sm:$0xff] }
 0x1aa   : > { %6240 = vmatprep.subr.bf16.mxu0 %v9611_v55 }
 0x1ac   : > { %5466 = vmatmul.mubr.f32.gmra.mrb[12].mxu0 %v9612_v8 }
 0x1ad   : > { %5468 = vmatprep.mubr.f32.mxu0 %v9613_v47  ;;  %6242 = vmatpush3.bf16.msra.mxu0 %v9611_v55  ;;  %v9260_v55 = vand.u32 4294901760, %v8213_v0 }
 0x1ae   : > { %6244 = vmatprep.subr.bf16.mxu0 %v9614_v30 }
 0x1b0   : > { %5469 = vmatmul.mubr.f32.gmra.mrb[14].mxu0 %v9615_v14 }
 0x1b1   : > { %5471 = vmatprep.mubr.f32.mxu0 %v9616_v15  ;;  %6246 = vmatpush3.bf16.msra.mxu0 %v9614_v30 }
 0x1b4   : > { %5472 = vmatmul.mubr.f32.gmra.mrb[16].mxu0 %v9617_v12 }
 0x1b5   : > { %5474 = vmatprep.mubr.f32.mxu0 %v9618_v26 }
 0x1b8   : > { %5475 = vmatmul.mubr.f32.gmra.mrb[18].mxu0 %v9619_v32 }
 0x1b9   : > { %5477 = vmatprep.mubr.f32.mxu0 %v9620_v54 }
 0x1bc   : > { %5478 = vmatmul.mubr.f32.gmra.mrb[20].mxu0 %v9621_v25 }
 0x1bd   : > { %5480 = vmatprep.mubr.f32.mxu0 %v9622_v4 }
 0x1c0   : > { %5481 = vmatmul.mubr.f32.gmra.mrb[22].mxu0 %v9623_v43 }
 0x1c1   : > { %5483 = vmatprep.mubr.f32.mxu0 %v9624_v42 }
 0x1c4   : > { %5484 = vmatmul.mubr.f32.gmra.mrb[24].mxu0 %v9625_v57 }
 0x1c5   : > { %5486 = vmatprep.mubr.f32.mxu0 %v9626_v13 }
 0x1c8   : > { %5487 = vmatmul.mubr.f32.gmra.mrb[26].mxu0 %v9627_v62 }
 0x1c9   : > { %5489 = vmatprep.mubr.f32.mxu0 %v9628_v27 }
 0x1cc   : > { %5490 = vmatmul.mubr.f32.gmra.mrb[28].mxu0 %v9629_v2 }
 0x1cd   : > { %5492 = vmatprep.mubr.f32.mxu0 %v9630_v53 }
 0x1d0   : > { %5493 = vmatmul.mubr.f32.gmra.mrb[30].mxu0 %v9631_v34 }
 0x1d1   : > { %5527 = vmatprep.mubr.f32.mxu0 %v7274_v17  ;;  %v2323_v17 = vld [vmem:[#allocation7 + $0x50] sm:$0xff] }
 0x1d4   : > { %5528 = vmatmul.mubr.f32.vlgmr.msra.gmra.mrb[0].mxu0 %v7312_v33  ;;  %v2360_v33 = vand.u32 4294901760, %v2323_v17 }
 0x1d5   : > { %5530 = vmatprep.mubr.f32.mxu0 %v7334_v44 }
 0x1d6   : > { %v8226_v50 = vsub.f32 %v2323_v17, %v2360_v33 }
 0x1d8   : > { %5531 = vmatmul.mubr.f32.gmra.mrb[2].mxu0 %v7336_v45  ;;  %9637 = vst [vmem:[#allocation34_spill] sm:$0xff] %v8226_v50 }
 0x1d9   : > { %5533 = vmatprep.mubr.f32.mxu0 %v7348_v52  ;;  %v2325_v52 = vld [vmem:[#allocation7 + $0x60] sm:$0xff] }
 0x1dc   : > { %5534 = vmatmul.mubr.f32.gmra.mrb[4].mxu0 %v7367_v59  ;;  %v2326_v59 = vld [vmem:[#allocation7 + $0x68] sm:$0xff] }
 0x1dd   : > { %5536 = vmatprep.mubr.f32.mxu0 %v7421_v11  ;;  %v2369_v11 = vand.u32 4294901760, %v2326_v59 }
 0x1e0   : > { %5537 = vmatmul.mubr.f32.gmra.mrb[6].mxu0 %v7423_v46 }
 0x1e1   : > { %5539 = vmatprep.mubr.f32.mxu0 %v7447_v5  ;;  %v2366_v5 = vand.u32 4294901760, %v2325_v52 }
 0x1e3   : > { %v8197_v46 = vpack.c.bf16 %v2369_v11, %v2366_v5 }
 0x1e4   : > { %5540 = vmatmul.mubr.f32.gmra.mrb[8].mxu0 %v7470_v28  ;;  %v2324_v28 = vld [vmem:[#allocation7 + $0x58] sm:$0xff] }
 0x1e5   : > { %5542 = vmatprep.mubr.f32.mxu0 %v7473_v20  ;;  %v2363_v44 = vand.u32 4294901760, %v2324_v28  ;;  %9633 = vst [vmem:[#allocation25_spill] sm:$0xff] %v8197_v46  ;;  %v2327_v20 = vld [vmem:[#allocation7 + $0x70] sm:$0xff] }
 0x1e6   : > { %v2372_v58 = vand.u32 4294901760, %v2327_v20 }
 0x1e7   : > { %v8193_v45 = vpack.c.bf16 %v2363_v44, %v2360_v33  ;;  %v8228_v23 = vsub.f32 %v2324_v28, %v2363_v44  ;;  %v8260_v28 = vpack.c.bf16 %v8213_v0, %v8208_v39  ;;  %v8265_v33 = vsub.f32 %v8048_v36, %v2336_v29 }
 0x1e8   : > { %5543 = vmatmul.mubr.f32.gmra.mrb[10].mxu0 %v7514_v48  ;;  %v2328_v48 = vld [vmem:[#allocation7 + $0x78] sm:$0xff]  ;;  %v8270_v44 = vsub.f32 %v8053_v60, %v2339_v16  ;;  %v8293_v60 = vsub.f32 %v8078_v7, %v2348_v1  ;;  %v8298_v29 = vsub.f32 %v8080_v56, %v2351_v3  ;;  %v8312_v16 = vsub.f32 %v8099_v63, %v2357_v49 }
 0x1e9   : > { %5545 = vmatprep.mubr.f32.mxu0 %v9610_v37  ;;  %9632 = vst [vmem:[#allocation15_spill] sm:$0xff] %v8193_v45  ;;  %6268 = vmatprep.subr.bf16.mxu1 %v8193_v45  ;;  %v2375_v21 = vand.u32 4294901760, %v2328_v48  ;;  %v9261_v37 = vand.u32 4294901760, %v8208_v39  ;;  %9638 = vst [vmem:[#allocation18_spill] sm:$0xff] %v8228_v23  ;;  %v9258_v7 = vand.u32 4294901760, %v8265_v33 }
 0x1ea   : > { %6270 = vmatpush3.bf16.msra.mxu1 %v8193_v45  ;;  %9641 = vst [vmem:[#allocation19_spill] sm:$0xff] %v8265_v33  ;;  %9642 = vst [vmem:[#allocation37_spill] sm:$0xff] %v8270_v44  ;;  %v9257_v56 = vand.u32 4294901760, %v8270_v44 }
 0x1eb   : > { %6272 = vmatprep.subr.bf16.mxu1 %v8197_v46  ;;  %v8201_v38 = vpack.c.bf16 %v2375_v21, %v2372_v58  ;;  %9645 = vst [vmem:[#allocation43_spill] sm:$0xff] %v8293_v60  ;;  %9646 = vst [vmem:[#allocation45_spill] sm:$0xff] %v8298_v29  ;;  %v2748_v3 = vsub.f32 %v8265_v33, %v9258_v7 }
 0x1ec   : > { %5546 = vmatmul.mubr.f32.gmra.mrb[12].mxu0 %v9612_v8  ;;  %v2734_v8 = vsub.f32 %v8208_v39, %v9261_v37  ;;  %9648 = vst [vmem:[#allocation49_spill] sm:$0xff] %v8312_v16 }
 0x1ed   : > { %5548 = vmatprep.mubr.f32.mxu0 %v9613_v47  ;;  %9634 = vst [vmem:[#allocation27_spill] sm:$0xff] %v8201_v38  ;;  %v2741_v47 = vsub.f32 %v8213_v0, %v9260_v55 }
 0x1ee   : > { %6274 = vmatpush3.bf16.msra.mxu1 %v8197_v46  ;;  %v2735_v30 = vand.u32 4294901760, %v2734_v8 }
 0x1ef   : > { %6276 = vmatprep.subr.bf16.mxu1 %v8201_v38  ;;  %v2742_v6 = vand.u32 4294901760, %v2741_v47 }
 0x1f0   : > { %5549 = vmatmul.mubr.f32.gmra.mrb[14].mxu0 %v9615_v14  ;;  %v9253_v14 = vand.u32 4294901760, %v8226_v50 }
 0x1f1   : > { %5551 = vmatprep.mubr.f32.mxu0 %v9616_v15  ;;  %v8223_v40 = vpack.c.bf16 %v2742_v6, %v2735_v30  ;;  %v9252_v15 = vand.u32 4294901760, %v8228_v23 }
 0x1f2   : > { %6278 = vmatpush3.bf16.msra.mxu1 %v8201_v38 }
 0x1f3   : > { %6280 = vmatprep.subr.bf16.mxu1 %v8223_v40 }
 0x1f4   : > { %5552 = vmatmul.mubr.f32.gmra.mrb[16].mxu0 %v9617_v12  ;;  %v2804_v12 = vsub.f32 %v8226_v50, %v9253_v14 }
 0x1f5   : > { %5554 = vmatprep.mubr.f32.mxu0 %v9618_v26  ;;  %v2811_v26 = vsub.f32 %v8228_v23, %v9252_v15 }
 0x1f8   : > { %5555 = vmatmul.mubr.f32.gmra.mrb[18].mxu0 %v9619_v32  ;;  %v8238_v32 = vsub.f32 %v2325_v52, %v2366_v5  ;;  %v8274_v52 = vpack.c.bf16 %v8270_v44, %v8265_v33  ;;  %v8284_v5 = vsub.f32 %v8058_v31, %v2345_v24  ;;  %v8307_v31 = vsub.f32 %v8097_v22, %v2354_v61 }
 0x1f9   : > { %5557 = vmatprep.mubr.f32.mxu0 %v9620_v54  ;;  %v8240_v54 = vsub.f32 %v2326_v59, %v2369_v11  ;;  %v8279_v59 = vsub.f32 %v8056_v41, %v2342_v18  ;;  %v8302_v41 = vpack.c.bf16 %v8298_v29, %v8293_v60  ;;  %v8320_v24 = vpack.c.bf16 %v8228_v23, %v8226_v50 }
 0x1fa   : > { %9639 = vst [vmem:[#allocation35_spill] sm:$0xff] %v8238_v32  ;;  %9644 = vst [vmem:[#allocation23_spill] sm:$0xff] %v8284_v5  ;;  %v8316_v18 = vpack.c.bf16 %v8312_v16, %v8307_v31  ;;  %v2755_v22 = vsub.f32 %v8270_v44, %v9257_v56  ;;  %v9254_v49 = vand.u32 4294901760, %v8284_v5 }
 0x1fb   : > { %9640 = vst [vmem:[#allocation36_spill] sm:$0xff] %v8240_v54  ;;  %9643 = vst [vmem:[#allocation38_spill] sm:$0xff] %v8279_v59  ;;  %v8288_v36 = vpack.c.bf16 %v8284_v5, %v8279_v59  ;;  %v8326_v1 = vpack.c.bf16 %v8240_v54, %v8238_v32  ;;  %v9255_v61 = vand.u32 4294901760, %v8279_v59 }
 0x1fc   : > { %5558 = vmatmul.mubr.f32.gmra.mrb[20].mxu0 %v9621_v25  ;;  %v2805_v25 = vand.u32 4294901760, %v2804_v12  ;;  %9647 = vst [vmem:[#allocation46_spill] sm:$0xff] %v8307_v31  ;;  %v2756_v8 = vand.u32 4294901760, %v2755_v22  ;;  %v2769_v12 = vsub.f32 %v8284_v5, %v9254_v49 }
 0x1fd   : > { %5560 = vmatprep.mubr.f32.mxu0 %v9622_v4  ;;  %v2812_v4 = vand.u32 4294901760, %v2811_v26  ;;  %v2762_v6 = vsub.f32 %v8279_v59, %v9255_v61 }
 0x1fe   : > { %v2770_v14 = vand.u32 4294901760, %v2769_v12 }
 0x1ff   : > { %v2763_v15 = vand.u32 4294901760, %v2762_v6 }
 0x200   : > { %5561 = vmatmul.mubr.f32.gmra.mrb[22].mxu0 %v9623_v43  ;;  %v9251_v43 = vand.u32 4294901760, %v8238_v32 }
 0x201   : > { %5563 = vmatprep.mubr.f32.mxu0 %v9624_v42  ;;  %v9250_v42 = vand.u32 4294901760, %v8240_v54 }
 0x204   : > { %5564 = vmatmul.mubr.f32.gmra.mrb[24].mxu0 %v9625_v57  ;;  %v8244_v57 = vpack.c.bf16 %v2812_v4, %v2805_v25 }
 0x205   : > { %5566 = vmatprep.mubr.f32.mxu0 %v9626_v13  ;;  %v2818_v13 = vsub.f32 %v8238_v32, %v9251_v43 }
 0x208   : > { %5567 = vmatmul.mubr.f32.gmra.mrb[26].mxu0 %v9627_v62  ;;  %v2825_v62 = vsub.f32 %v8240_v54, %v9250_v42 }
 0x209   : > { %5569 = vmatprep.mubr.f32.mxu0 %v9628_v27  ;;  %v8252_v27 = vsub.f32 %v2327_v20, %v2372_v58 }
 0x20c   : > { %5570 = vmatmul.mubr.f32.gmra.mrb[28].mxu0 %v9629_v2  ;;  %v8254_v2 = vsub.f32 %v2328_v48, %v2375_v21  ;;  %v2749_v21 = vand.u32 4294901760, %v2748_v3 }
 0x20d   : > { %5572 = vmatprep.mubr.f32.mxu0 %v9630_v53  ;;  %v2819_v53 = vand.u32 4294901760, %v2818_v13 }
 0x20e   : > { %v6283_v22 = vpack.c.bf16 %v2756_v8, %v2749_v21  ;;  %v9267_v21 = vand.u32 4294901760, %v8307_v31  ;;  %v9663_v59 = vand.u32 4294901760, %v8254_v2 }
 0x210   : > { %5573 = vmatmul.mubr.f32.gmra.mrb[30].mxu0 %v9631_v34  ;;  %v2826_v34 = vand.u32 4294901760, %v2825_v62 }
 0x212   : > { %v8256_v17 = vpack.c.bf16 %v2826_v34, %v2819_v53  ;;  %v9262_v53 = vand.u32 4294901760, %v8293_v60 }
 0x214   : > { %v2776_v6 = vsub.f32 %v8293_v60, %v9262_v53  ;;  %v6287_v53 = vpack.c.bf16 %v2770_v14, %v2763_v15 }
 0x2a7   : > { %v5529_v63 = vpop.f32.mrb[0].mxu0 }
 0x2a8   : > { %2282 = vst [vmem:[%s8337_s21 + $0x8] sm:$0xff] %v5529_v63  ;;  %v8340_v11 = vand.u32 4294901760, %v5529_v63  ;;  %v2091_v20 = vpop.f32.mrb[1].mxu0 }
 0x2a9   : > { %2281 = vst [vmem:[%s8337_s21] sm:$0xff] %v2091_v20  ;;  %v8343_v48 = vand.u32 4294901760, %v2091_v20 }
 0x2aa   : > { %v8346_v58 = vsub.f32 %v5529_v63, %v8340_v11  ;;  %v9264_v63 = vand.u32 4294901760, %v8298_v29 }
 0x2ab   : > { %v8349_v47 = vsub.f32 %v2091_v20, %v8343_v48  ;;  %v5532_v30 = vpop.f32.mrb[2].mxu0 }
 0x2ac   : > { %2284 = vst [vmem:[%s8337_s21 + $0x18] sm:$0xff] %v5532_v30  ;;  %v8358_v26 = vand.u32 4294901760, %v5532_v30  ;;  %v2103_v25 = vpop.f32.mrb[3].mxu0  ;;  %v9256_v4 = vand.u32 4294901760, %v8346_v58  ;;  %v2783_v55 = vsub.f32 %v8298_v29, %v9264_v63  ;;  %v2790_v63 = vsub.f32 %v8307_v31, %v9267_v21 }
 0x2ad   : > { %2283 = vst [vmem:[%s8337_s21 + $0x10] sm:$0xff] %v2103_v25  ;;  %v8362_v13 = vand.u32 4294901760, %v2103_v25  ;;  %v9259_v62 = vand.u32 4294901760, %v8349_v47 }
 0x2ae   : > { %v8367_v34 = vsub.f32 %v5532_v30, %v8358_v26  ;;  %v2423_v3 = vsub.f32 %v8346_v58, %v9256_v4 }
 0x2af   : > { %v8374_v20 = vsub.f32 %v2103_v25, %v8362_v13  ;;  %v5535_v42 = vpop.f32.mrb[4].mxu0  ;;  %v2413_v43 = vsub.f32 %v8349_v47, %v9259_v62 }
 0x2b0   : > { %2286 = vst [vmem:[%s8337_s21 + $0x28] sm:$0xff] %v5535_v42  ;;  %v8380_v30 = vand.u32 4294901760, %v5535_v42  ;;  %v2115_v49 = vpop.f32.mrb[5].mxu0  ;;  %v9263_v61 = vand.u32 4294901760, %v8367_v34  ;;  %v2424_v7 = vand.u32 4294901760, %v2423_v3 }
 0x2b1   : > { %2285 = vst [vmem:[%s8337_s21 + $0x20] sm:$0xff] %v2115_v49  ;;  %v8386_v25 = vand.u32 4294901760, %v2115_v49  ;;  %v2414_v4 = vand.u32 4294901760, %v2413_v43  ;;  %v9266_v56 = vand.u32 4294901760, %v8374_v20 }
 0x2b2   : > { %v8393_v12 = vsub.f32 %v5535_v42, %v8380_v30  ;;  %v2443_v62 = vsub.f32 %v8367_v34, %v9263_v61 }
 0x2b3   : > { %v8402_v43 = vsub.f32 %v2115_v49, %v8386_v25  ;;  %v5538_v37 = vpop.f32.mrb[6].mxu0  ;;  %5607 = vmatprep.mubr.f32.mxu1 %v2414_v4  ;;  %v2433_v42 = vsub.f32 %v8374_v20, %v9266_v56  ;;  %v9650_v49 = vand.u32 4294901760, %v8312_v16 }
 0x2b4   : > { %9649 = vst [vmem:[#allocation54_spill] sm:$0xff] %v8393_v12  ;;  %2288 = vst [vmem:[%s8337_s21 + $0x38] sm:$0xff] %v5538_v37  ;;  %v8408_v3 = vand.u32 4294901760, %v5538_v37  ;;  %v2127_v8 = vpop.f32.mrb[7].mxu0  ;;  %5608 = vmatmul.mubr.f32.vlgmr.msra.gmra.mrb[0].mxu1 %v2424_v7  ;;  %v2777_v7 = vand.u32 4294901760, %v2776_v6  ;;  %v2444_v61 = vand.u32 4294901760, %v2443_v62 }
 0x2b5   : > { %v2797_v4 = vsub.f32 %v8312_v16, %v9650_v49  ;;  %2287 = vst [vmem:[%s8337_s21 + $0x30] sm:$0xff] %v2127_v8  ;;  %v8418_v54 = vand.u32 4294901760, %v2127_v8  ;;  %6282 = vmatpush3.bf16.msra.mxu1 %v8223_v40  ;;  %v2434_v14 = vand.u32 4294901760, %v2433_v42  ;;  %v9271_v15 = vand.u32 4294901760, %v8402_v43 }
 0x2b6   : > { %v8423_v56 = vsub.f32 %v5538_v37, %v8408_v3  ;;  %v9652_v21 = vand.u32 4294901760, %v8393_v12  ;;  %6284 = vmatprep.subr.bf16.mxu1 %v6283_v22  ;;  %v2784_v49 = vand.u32 4294901760, %v2783_v55  ;;  %v2791_v42 = vand.u32 4294901760, %v2790_v63 }
 0x2b7   : > { %v8429_v23 = vsub.f32 %v2127_v8, %v8418_v54  ;;  %v5541_v50 = vpop.f32.mrb[8].mxu0  ;;  %5610 = vmatprep.mubr.f32.mxu1 %v2434_v14  ;;  %v2453_v40 = vsub.f32 %v8402_v43, %v9271_v15 }
 0x2b8   : > { %9651 = vst [vmem:[#allocation55_spill] sm:$0xff] %v8423_v56  ;;  %v2463_v32 = vsub.f32 %v8393_v12, %v9652_v21  ;;  %2290 = vst [vmem:[%s8337_s21 + $0x48] sm:$0xff] %v5541_v50  ;;  %v8435_v37 = vand.u32 4294901760, %v5541_v50  ;;  %v2139_v6 = vpop.f32.mrb[9].mxu0  ;;  %5611 = vmatmul.mubr.f32.gmra.mrb[2].mxu1 %v2444_v61  ;;  %v9275_v62 = vand.u32 4294901760, %v8423_v56  ;;  %v2798_v21 = vand.u32 4294901760, %v2797_v4 }
 0x2b9   : > { %9653 = vst [vmem:[#allocation56_spill] sm:$0xff] %v8429_v23  ;;  %2289 = vst [vmem:[%s8337_s21 + $0x40] sm:$0xff] %v2139_v6  ;;  %v8439_v55 = vand.u32 4294901760, %v2139_v6  ;;  %v2454_v8 = vand.u32 4294901760, %v2453_v40  ;;  %6286 = vmatpush3.bf16.msra.mxu1 %v6283_v22  ;;  %v9276_v14 = vand.u32 4294901760, %v8429_v23  ;;  %v6291_v63 = vpack.c.bf16 %v2784_v49, %v2777_v7 }
 0x2ba   : > { %v8443_v15 = vsub.f32 %v5541_v50, %v8435_v37  ;;  %v2464_v16 = vand.u32 4294901760, %v2463_v32  ;;  %v2483_v61 = vsub.f32 %v8423_v56, %v9275_v62  ;;  %6288 = vmatprep.subr.bf16.mxu1 %v6287_v53  ;;  %v6295_v29 = vpack.c.bf16 %v2798_v21, %v2791_v42 }
 0x2bb   : > { %v8449_v4 = vsub.f32 %v2139_v6, %v8439_v55  ;;  %v5544_v31 = vpop.f32.mrb[10].mxu0  ;;  %5613 = vmatprep.mubr.f32.mxu1 %v2454_v8  ;;  %v2473_v22 = vsub.f32 %v8429_v23, %v9276_v14 }
 0x2bc   : > { %9654 = vst [vmem:[#allocation59_spill] sm:$0xff] %v8443_v15  ;;  %2292 = vst [vmem:[%s8337_s21 + $0x58] sm:$0xff] %v5544_v31  ;;  %v8455_v40 = vand.u32 4294901760, %v5544_v31  ;;  %v2151_v50 = vpop.f32.mrb[11].mxu0  ;;  %5614 = vmatmul.mubr.f32.gmra.mrb[4].mxu1 %v2464_v16  ;;  %v9277_v32 = vand.u32 4294901760, %v8443_v15  ;;  %v2484_v14 = vand.u32 4294901760, %v2483_v61 }
 0x2bd   : > { %9655 = vst [vmem:[#allocation68_spill] sm:$0xff] %v8449_v4  ;;  %2291 = vst [vmem:[%s8337_s21 + $0x50] sm:$0xff] %v2151_v50  ;;  %v8459_v7 = vand.u32 4294901760, %v2151_v50  ;;  %v2474_v49 = vand.u32 4294901760, %v2473_v22  ;;  %v9278_v6 = vand.u32 4294901760, %v8449_v4  ;;  %6290 = vmatpush3.bf16.msra.mxu1 %v6287_v53 }
 0x2be   : > { %9656 = vst [vmem:[#allocation69_spill] sm:$0xff] %v8455_v40  ;;  %v8464_v62 = vsub.f32 %v5544_v31, %v8455_v40  ;;  %v2503_v16 = vsub.f32 %v8443_v15, %v9277_v32  ;;  %6292 = vmatprep.subr.bf16.mxu1 %v6291_v63 }
 0x2bf   : > { %v8471_v21 = vsub.f32 %v2151_v50, %v8459_v7  ;;  %v5547_v22 = vpop.f32.mrb[12].mxu0  ;;  %5616 = vmatprep.mubr.f32.mxu1 %v2474_v49  ;;  %v2493_v53 = vsub.f32 %v8449_v4, %v9278_v6  ;;  %v9661_v49 = vand.u32 4294901760, %v8252_v27 }
 0x2c0   : > { %9657 = vst [vmem:[#allocation70_spill] sm:$0xff] %v8464_v62  ;;  %2294 = vst [vmem:[%s8337_s21 + $0x68] sm:$0xff] %v5547_v22  ;;  %v8477_v31 = vand.u32 4294901760, %v5547_v22  ;;  %v2163_v61 = vpop.f32.mrb[13].mxu0  ;;  %5617 = vmatmul.mubr.f32.gmra.mrb[6].mxu1 %v2484_v14  ;;  %v9283_v8 = vand.u32 4294901760, %v8464_v62  ;;  %v2504_v5 = vand.u32 4294901760, %v2503_v16 }
 0x2c1   : > { %9658 = vst [vmem:[#allocation21_spill] sm:$0xff] %v8471_v21  ;;  %2293 = vst [vmem:[%s8337_s21 + $0x60] sm:$0xff] %v2163_v61  ;;  %v8481_v32 = vand.u32 4294901760, %v2163_v61  ;;  %v2494_v42 = vand.u32 4294901760, %v2493_v53  ;;  %6294 = vmatpush3.bf16.msra.mxu1 %v6291_v63  ;;  %v2832_v6 = vsub.f32 %v8252_v27, %v9661_v49  ;;  %v2839_v53 = vsub.f32 %v8254_v2, %v9663_v59 }
 0x2c2   : > { %9659 = vst [vmem:[#allocation22_spill] sm:$0xff] %v8477_v31  ;;  %v8488_v60 = vsub.f32 %v5547_v22, %v8477_v31  ;;  %v2523_v14 = vsub.f32 %v8464_v62, %v9283_v8  ;;  %6296 = vmatprep.subr.bf16.mxu1 %v6295_v29  ;;  %v9665_v49 = vand.u32 4294901760, %v8471_v21 }
 0x2c3   : > { %9660 = vst [vmem:[#allocation29_spill] sm:$0xff] %v8481_v32  ;;  %v8497_v63 = vsub.f32 %v2163_v61, %v8481_v32  ;;  %v5550_v50 = vpop.f32.mrb[14].mxu0  ;;  %5619 = vmatprep.mubr.f32.mxu1 %v2494_v42  ;;  %v2833_v42 = vand.u32 4294901760, %v2832_v6  ;;  %v2840_v39 = vand.u32 4294901760, %v2839_v53 }
 0x2c4   : > { %9662 = vst [vmem:[#allocation30_spill] sm:$0xff] %v8488_v60  ;;  %v2513_v22 = vsub.f32 %v8471_v21, %v9665_v49  ;;  %2296 = vst [vmem:[%s8337_s21 + $0x78] sm:$0xff] %v5550_v50  ;;  %v8503_v16 = vand.u32 4294901760, %v5550_v50  ;;  %v2175_v44 = vpop.f32.mrb[15].mxu0  ;;  %5620 = vmatmul.mubr.f32.gmra.mrb[8].mxu1 %v2504_v5  ;;  %v9289_v8 = vand.u32 4294901760, %v8488_v60  ;;  %v2524_v49 = vand.u32 4294901760, %v2523_v14 }
 0x2c5   : > { %9664 = vst [vmem:[#allocation32_spill] sm:$0xff] %v8497_v63  ;;  %2295 = vst [vmem:[%s8337_s21 + $0x70] sm:$0xff] %v2175_v44  ;;  %v8507_v33 = vand.u32 4294901760, %v2175_v44  ;;  %v9290_v61 = vand.u32 4294901760, %v8497_v63  ;;  %6298 = vmatpush3.bf16.msra.mxu1 %v6295_v29 }
 0x2c6   : > { %9666 = vst [vmem:[#allocation33_spill] sm:$0xff] %v8503_v16  ;;  %v2514_v59 = vand.u32 4294901760, %v2513_v22  ;;  %v8511_v0 = vsub.f32 %v5550_v50, %v8503_v16  ;;  %v2543_v5 = vsub.f32 %v8488_v60, %v9289_v8  ;;  %6300 = vmatprep.subr.bf16.mxu1 %v8244_v57  ;;  %v6307_v60 = vpack.c.bf16 %v2840_v39, %v2833_v42 }
 0x2c7   : > { %9667 = vst [vmem:[#allocation39_spill] sm:$0xff] %v8507_v33  ;;  %v8518_v38 = vsub.f32 %v2175_v44, %v8507_v33  ;;  %v5553_v22 = vpop.f32.mrb[16].mxu0  ;;  %v2533_v29 = vsub.f32 %v8497_v63, %v9290_v61 }
 0x2c8   : > { %9668 = vst [vmem:[#allocation40_spill] sm:$0xff] %v8511_v0  ;;  %5622 = vmatprep.mubr.f32.mxu1 %v2514_v59  ;;  %2298 = vst [vmem:[%s8337_s21 + $0x88] sm:$0xff] %v5553_v22  ;;  %v8524_v6 = vand.u32 4294901760, %v5553_v22  ;;  %v2187_v50 = vpop.f32.mrb[17].mxu0  ;;  %v9295_v14 = vand.u32 4294901760, %v8511_v0  ;;  %v2544_v61 = vand.u32 4294901760, %v2543_v5 }
 0x2c9   : > { %9669 = vst [vmem:[#allocation48_spill] sm:$0xff] %v8518_v38  ;;  %5623 = vmatmul.mubr.f32.gmra.mrb[10].mxu1 %v2524_v49  ;;  %2297 = vst [vmem:[%s8337_s21 + $0x80] sm:$0xff] %v2187_v50  ;;  %v8528_v8 = vand.u32 4294901760, %v2187_v50  ;;  %v2534_v53 = vand.u32 4294901760, %v2533_v29  ;;  %v9298_v44 = vand.u32 4294901760, %v8518_v38 }
 0x2ca   : > { %9670 = vst [vmem:[#allocation51_spill] sm:$0xff] %v8524_v6  ;;  %6302 = vmatpush3.bf16.msra.mxu1 %v8244_v57  ;;  %v8533_v59 = vsub.f32 %v5553_v22, %v8524_v6  ;;  %v2563_v49 = vsub.f32 %v8511_v0, %v9295_v14 }
 0x2cb   : > { %9671 = vst [vmem:[#allocation58_spill] sm:$0xff] %v8528_v8  ;;  %6304 = vmatprep.subr.bf16.mxu1 %v8256_v17  ;;  %v8540_v46 = vsub.f32 %v2187_v50, %v8528_v8  ;;  %v5556_v29 = vpop.f32.mrb[18].mxu0  ;;  %5625 = vmatprep.mubr.f32.mxu1 %v2534_v53  ;;  %v2553_v57 = vsub.f32 %v8518_v38, %v9298_v44 }
 0x2cc   : > { %9672 = vst [vmem:[#allocation60_spill] sm:$0xff] %v8533_v59  ;;  %2300 = vst [vmem:[%s8337_s21 + $0x98] sm:$0xff] %v5556_v29  ;;  %v8546_v22 = vand.u32 4294901760, %v5556_v29  ;;  %v2199_v5 = vpop.f32.mrb[19].mxu0  ;;  %v9301_v14 = vand.u32 4294901760, %v8533_v59  ;;  %v2564_v53 = vand.u32 4294901760, %v2563_v49 }
 0x2cd   : > { %9673 = vst [vmem:[#allocation63_spill] sm:$0xff] %v8540_v46  ;;  %5626 = vmatmul.mubr.f32.gmra.mrb[12].mxu1 %v2544_v61  ;;  %2299 = vst [vmem:[%s8337_s21 + $0x90] sm:$0xff] %v2199_v5  ;;  %v8550_v0 = vand.u32 4294901760, %v2199_v5  ;;  %v2554_v39 = vand.u32 4294901760, %v2553_v57  ;;  %v9304_v42 = vand.u32 4294901760, %v8540_v46 }
 0x2ce   : > { %9674 = vst [vmem:[#allocation64_spill] sm:$0xff] %v8546_v22  ;;  %6306 = vmatpush3.bf16.msra.mxu1 %v8256_v17  ;;  %v8555_v50 = vsub.f32 %v5556_v29, %v8546_v22  ;;  %v2583_v44 = vsub.f32 %v8533_v59, %v9301_v14 }
 0x2cf   : > { %9675 = vst [vmem:[#allocation41_spill] sm:$0xff] %v8550_v0  ;;  %6308 = vmatprep.subr.bf16.mxu1 %v6307_v60  ;;  %v8561_v61 = vsub.f32 %v2199_v5, %v8550_v0  ;;  %v5559_v38 = vpop.f32.mrb[20].mxu0  ;;  %5628 = vmatprep.mubr.f32.mxu1 %v2554_v39  ;;  %v2573_v57 = vsub.f32 %v8540_v46, %v9304_v42 }
 0x2d0   : > { %9676 = vst [vmem:[#allocation26_spill] sm:$0xff] %v8555_v50  ;;  %2302 = vst [vmem:[%s8337_s21 + $0xa8] sm:$0xff] %v5559_v38  ;;  %v8567_v17 = vand.u32 4294901760, %v5559_v38  ;;  %v2211_v29 = vpop.f32.mrb[21].mxu0  ;;  %v9309_v49 = vand.u32 4294901760, %v8555_v50  ;;  %v2584_v42 = vand.u32 4294901760, %v2583_v44 }
 0x2d1   : > { %9677 = vst [vmem:[#allocation42_spill] sm:$0xff] %v8561_v61  ;;  %5629 = vmatmul.mubr.f32.gmra.mrb[14].mxu1 %v2564_v53  ;;  %2301 = vst [vmem:[%s8337_s21 + $0xa0] sm:$0xff] %v2211_v29  ;;  %v8571_v14 = vand.u32 4294901760, %v2211_v29  ;;  %v2574_v59 = vand.u32 4294901760, %v2573_v57  ;;  %v9314_v5 = vand.u32 4294901760, %v8561_v61 }
 0x2d2   : > { %9678 = vst [vmem:[#allocation44_spill] sm:$0xff] %v8567_v17  ;;  %6310 = vmatpush3.bf16.msra.mxu1 %v6307_v60  ;;  %v8575_v39 = vsub.f32 %v5559_v38, %v8567_v17  ;;  %v2603_v46 = vsub.f32 %v8555_v50, %v9309_v49 }
 0x2d3   : > { %9679 = vst [vmem:[#allocation31_spill] sm:$0xff] %v8571_v14  ;;  %6312 = vmatprep.subr.bf16.mxu1 %v8260_v28  ;;  %v8582_v53 = vsub.f32 %v2211_v29, %v8571_v14  ;;  %v5562_v63 = vpop.f32.mrb[22].mxu0  ;;  %5631 = vmatprep.mubr.f32.mxu1 %v2574_v59  ;;  %v2593_v57 = vsub.f32 %v8561_v61, %v9314_v5 }
 0x2d4   : > { %9680 = vst [vmem:[#allocation47_spill] sm:$0xff] %v8575_v39  ;;  %2304 = vst [vmem:[%s8337_s21 + $0xb8] sm:$0xff] %v5562_v63  ;;  %v8588_v38 = vand.u32 4294901760, %v5562_v63  ;;  %v2223_v60 = vpop.f32.mrb[23].mxu0  ;;  %v9319_v44 = vand.u32 4294901760, %v8575_v39  ;;  %v2604_v62 = vand.u32 4294901760, %v2603_v46 }
 0x2d5   : > { %9681 = vst [vmem:[#allocation50_spill] sm:$0xff] %v8582_v53  ;;  %5632 = vmatmul.mubr.f32.gmra.mrb[16].mxu1 %v2584_v42  ;;  %2303 = vst [vmem:[%s8337_s21 + $0xb0] sm:$0xff] %v2223_v60  ;;  %v8592_v49 = vand.u32 4294901760, %v2223_v60  ;;  %v2594_v29 = vand.u32 4294901760, %v2593_v57  ;;  %v9324_v50 = vand.u32 4294901760, %v8582_v53 }
 0x2d6   : > { %9682 = vst [vmem:[#allocation52_spill] sm:$0xff] %v8588_v38  ;;  %v8596_v59 = vsub.f32 %v5562_v63, %v8588_v38  ;;  %v2623_v5 = vsub.f32 %v8575_v39, %v9319_v44 }
 0x2d7   : > { %9683 = vst [vmem:[#allocation53_spill] sm:$0xff] %v8592_v49  ;;  %v8602_v61 = vsub.f32 %v2223_v60, %v8592_v49  ;;  %v5565_v42 = vpop.f32.mrb[24].mxu0  ;;  %5634 = vmatprep.mubr.f32.mxu1 %v2594_v29  ;;  %v2613_v45 = vsub.f32 %v8582_v53, %v9324_v50 }
 0x2d8   : > { %9684 = vst [vmem:[#allocation57_spill] sm:$0xff] %v8596_v59  ;;  %2306 = vst [vmem:[%s8337_s21 + $0xc8] sm:$0xff] %v5565_v42  ;;  %v8608_v57 = vand.u32 4294901760, %v5565_v42  ;;  %v2235_v63 = vpop.f32.mrb[25].mxu0  ;;  %v9329_v46 = vand.u32 4294901760, %v8596_v59  ;;  %v2624_v21 = vand.u32 4294901760, %v2623_v5 }
 0x2d9   : > { %9685 = vst [vmem:[#allocation61_spill] sm:$0xff] %v8602_v61  ;;  %5635 = vmatmul.mubr.f32.gmra.mrb[18].mxu1 %v2604_v62  ;;  %2305 = vst [vmem:[%s8337_s21 + $0xc0] sm:$0xff] %v2235_v63  ;;  %v8612_v44 = vand.u32 4294901760, %v2235_v63  ;;  %v2614_v60 = vand.u32 4294901760, %v2613_v45  ;;  %v9334_v39 = vand.u32 4294901760, %v8602_v61 }
 0x2da   : > { %9686 = vst [vmem:[#allocation62_spill] sm:$0xff] %v8608_v57  ;;  %v8616_v29 = vsub.f32 %v5565_v42, %v8608_v57  ;;  %v2643_v50 = vsub.f32 %v8596_v59, %v9329_v46 }
 0x2db   : > { %9687 = vst [vmem:[#allocation65_spill] sm:$0xff] %v8612_v44  ;;  %v8622_v53 = vsub.f32 %v2235_v63, %v8612_v44  ;;  %v5568_v62 = vpop.f32.mrb[26].mxu0  ;;  %5637 = vmatprep.mubr.f32.mxu1 %v2614_v60  ;;  %v2633_v15 = vsub.f32 %v8602_v61, %v9334_v39 }
 0x2dc   : > { %9688 = vst [vmem:[#allocation66_spill] sm:$0xff] %v8616_v29  ;;  %2308 = vst [vmem:[%s8337_s21 + $0xd8] sm:$0xff] %v5568_v62  ;;  %v8628_v45 = vand.u32 4294901760, %v5568_v62  ;;  %v2247_v42 = vpop.f32.mrb[27].mxu0  ;;  %v9339_v5 = vand.u32 4294901760, %v8616_v29  ;;  %v2644_v51 = vand.u32 4294901760, %v2643_v50 }
 0x2dd   : > { %9689 = vst [vmem:[#allocation67_spill] sm:$0xff] %v8622_v53  ;;  %5638 = vmatmul.mubr.f32.gmra.mrb[20].mxu1 %v2624_v21  ;;  %2307 = vst [vmem:[%s8337_s21 + $0xd0] sm:$0xff] %v2247_v42  ;;  %v8632_v46 = vand.u32 4294901760, %v2247_v42  ;;  %v2634_v63 = vand.u32 4294901760, %v2633_v15  ;;  %v9344_v59 = vand.u32 4294901760, %v8622_v53 }
 0x2de   : > { %9690 = vst [vmem:[#allocation71_spill] sm:$0xff] %v8628_v45  ;;  %v8636_v60 = vsub.f32 %v5568_v62, %v8628_v45  ;;  %v2663_v39 = vsub.f32 %v8616_v29, %v9339_v5 }
 0x2df   : > { %9691 = vst [vmem:[#allocation72_spill] sm:$0xff] %v8632_v46  ;;  %v8642_v61 = vsub.f32 %v2247_v42, %v8632_v46  ;;  %v5571_v21 = vpop.f32.mrb[28].mxu0  ;;  %5640 = vmatprep.mubr.f32.mxu1 %v2634_v63  ;;  %v2653_v4 = vsub.f32 %v8622_v53, %v9344_v59 }
 0x2e0   : > { %9692 = vst [vmem:[#allocation73_spill] sm:$0xff] %v8636_v60  ;;  %2310 = vst [vmem:[%s8337_s21 + $0xe8] sm:$0xff] %v5571_v21  ;;  %v8648_v15 = vand.u32 4294901760, %v5571_v21  ;;  %v2259_v62 = vpop.f32.mrb[29].mxu0  ;;  %v9351_v50 = vand.u32 4294901760, %v8636_v60  ;;  %v2664_v56 = vand.u32 4294901760, %v2663_v39 }
 0x2e1   : > { %9693 = vst [vmem:[#allocation74_spill] sm:$0xff] %v8642_v61  ;;  %5641 = vmatmul.mubr.f32.gmra.mrb[22].mxu1 %v2644_v51  ;;  %2309 = vst [vmem:[%s8337_s21 + $0xe0] sm:$0xff] %v2259_v62  ;;  %v8652_v5 = vand.u32 4294901760, %v2259_v62  ;;  %v2654_v42 = vand.u32 4294901760, %v2653_v4  ;;  %v9354_v29 = vand.u32 4294901760, %v8642_v61 }
 0x2e2   : > { %9694 = vst [vmem:[#allocation75_spill] sm:$0xff] %v8648_v15  ;;  %v8656_v63 = vsub.f32 %v5571_v21, %v8648_v15  ;;  %v2683_v59 = vsub.f32 %v8636_v60, %v9351_v50 }
 0x2e3   : > { %9695 = vst [vmem:[#allocation76_spill] sm:$0xff] %v8652_v5  ;;  %v8662_v53 = vsub.f32 %v2259_v62, %v8652_v5  ;;  %v5574_v51 = vpop.f32.mrb[30].mxu0  ;;  %5643 = vmatprep.mubr.f32.mxu1 %v2654_v42  ;;  %v2673_v19 = vsub.f32 %v8642_v61, %v9354_v29 }
 0x2e4   : > { %2312 = vst [vmem:[%s8337_s21 + $0xf8] sm:$0xff] %v5574_v51  ;;  %v8668_v4 = vand.u32 4294901760, %v5574_v51  ;;  %v2271_v23 = vpop.f32.mrb[31].mxu0  ;;  %v9361_v39 = vand.u32 4294901760, %v8656_v63  ;;  %v2684_v42 = vand.u32 4294901760, %v2683_v59 }
 0x2e5   : > { %5644 = vmatmul.mubr.f32.gmra.mrb[24].mxu1 %v2664_v56  ;;  %2311 = vst [vmem:[%s8337_s21 + $0xf0] sm:$0xff] %v2271_v23  ;;  %v8672_v21 = vand.u32 4294901760, %v2271_v23  ;;  %v2674_v50 = vand.u32 4294901760, %v2673_v19  ;;  %v9364_v62 = vand.u32 4294901760, %v8662_v53 }
 0x2e6   : > { %9696 = vst [vmem:[#allocation77_spill] sm:$0xff] %v8668_v4  ;;  %v8676_v60 = vsub.f32 %v5574_v51, %v8668_v4  ;;  %v2703_v29 = vsub.f32 %v8656_v63, %v9361_v39 }
 0x2e7   : > { %9697 = vst [vmem:[#allocation78_spill] sm:$0xff] %v8672_v21  ;;  %v8682_v61 = vsub.f32 %v2271_v23, %v8672_v21  ;;  %5646 = vmatprep.mubr.f32.mxu1 %v2674_v50  ;;  %v2693_v56 = vsub.f32 %v8662_v53, %v9364_v62  ;;  %v9716_v62 = vld [vmem:[#allocation28_spill] sm:$0xff] }
 0x2e8   : > { %v9362_v19 = vand.u32 4294901760, %v8676_v60  ;;  %v2704_v10 = vand.u32 4294901760, %v2703_v29  ;;  %v9705_v29 = vld [vmem:[#allocation59_spill] sm:$0xff] }
 0x2e9   : > { %5647 = vmatmul.mubr.f32.gmra.mrb[26].mxu1 %v2684_v42  ;;  %v9363_v12 = vand.u32 4294901760, %v8682_v61  ;;  %v2694_v51 = vand.u32 4294901760, %v2693_v56  ;;  %v9707_v42 = vld [vmem:[#allocation15_spill] sm:$0xff]  ;;  %v9708_v56 = vld [vmem:[#allocation70_spill] sm:$0xff] }
 0x2ea   : > { %v2723_v59 = vsub.f32 %v8676_v60, %v9362_v19  ;;  %v9714_v19 = vld [vmem:[#allocation16_spill] sm:$0xff] }
 0x2eb   : > { %5649 = vmatprep.mubr.f32.mxu1 %v2694_v51  ;;  %v2713_v23 = vsub.f32 %v8682_v61, %v9363_v12  ;;  %v9709_v51 = vld [vmem:[#allocation32_spill] sm:$0xff]  ;;  %v9715_v12 = vand.u32 4294901760, %v9714_v19  ;;  %v9725_v19 = vld [vmem:[#allocation61_spill] sm:$0xff] }
 0x2ec   : > { %v2724_v39 = vand.u32 4294901760, %v2723_v59  ;;  %v9710_v59 = vld [vmem:[#allocation25_spill] sm:$0xff] }
 0x2ed   : > { %5650 = vmatmul.mubr.f32.gmra.mrb[28].mxu1 %v2704_v10  ;;  %v2714_v50 = vand.u32 4294901760, %v2713_v23  ;;  %v6339_v10 = vpack.c.bf16 %v8254_v2, %v8252_v27  ;;  %v9711_v23 = vld [vmem:[#allocation30_spill] sm:$0xff] }
 0x2ef   : > { %5652 = vmatprep.mubr.f32.mxu1 %v2714_v50  ;;  %v9712_v50 = vld [vmem:[#allocation48_spill] sm:$0xff] }
 0x2f1   : > { %5653 = vmatmul.mubr.f32.gmra.mrb[30].mxu1 %v2724_v39  ;;  %v9706_v39 = vld [vmem:[#allocation21_spill] sm:$0xff] }
 0x2f2   : > { %5687 = vmatprep.mubr.f32.mxu1 %v8343_v48 }
 0x2f5   : > { %5688 = vmatmul.mubr.f32.vlgmr.msra.gmra.mrb[0].mxu1 %v8340_v11 }
 0x2f6   : > { %5690 = vmatprep.mubr.f32.mxu1 %v8362_v13  ;;  %6314 = vmatpush3.bf16.msra.mxu1 %v8260_v28  ;;  %v9698_v28 = vld [vmem:[#allocation17_spill] sm:$0xff] }
 0x2f7   : > { %6316 = vmatprep.subr.bf16.mxu1 %v8274_v52 }
 0x2f9   : > { %5691 = vmatmul.mubr.f32.gmra.mrb[2].mxu1 %v8358_v26 }
 0x2fa   : > { %5693 = vmatprep.mubr.f32.mxu1 %v8386_v25  ;;  %6318 = vmatpush3.bf16.msra.mxu1 %v8274_v52  ;;  %v9699_v52 = vld [vmem:[#allocation54_spill] sm:$0xff] }
 0x2fb   : > { %6320 = vmatprep.subr.bf16.mxu1 %v8288_v36 }
 0x2fd   : > { %5694 = vmatmul.mubr.f32.gmra.mrb[4].mxu1 %v8380_v30 }
 0x2fe   : > { %5696 = vmatprep.mubr.f32.mxu1 %v8418_v54  ;;  %6322 = vmatpush3.bf16.msra.mxu1 %v8288_v36  ;;  %v9700_v36 = vld [vmem:[#allocation56_spill] sm:$0xff] }
 0x2ff   : > { %6324 = vmatprep.subr.bf16.mxu1 %v8302_v41 }
 0x301   : > { %5697 = vmatmul.mubr.f32.gmra.mrb[6].mxu1 %v8408_v3 }
 0x302   : > { %5699 = vmatprep.mubr.f32.mxu1 %v8439_v55  ;;  %6326 = vmatpush3.bf16.msra.mxu1 %v8302_v41  ;;  %v9701_v41 = vld [vmem:[#allocation20_spill] sm:$0xff] }
 0x303   : > { %6328 = vmatprep.subr.bf16.mxu1 %v8316_v18 }
 0x305   : > { %5700 = vmatmul.mubr.f32.gmra.mrb[8].mxu1 %v8435_v37 }
 0x306   : > { %5702 = vmatprep.mubr.f32.mxu1 %v8459_v7  ;;  %6330 = vmatpush3.bf16.msra.mxu1 %v8316_v18  ;;  %v9702_v18 = vld [vmem:[#allocation55_spill] sm:$0xff] }
 0x307   : > { %6332 = vmatprep.subr.bf16.mxu1 %v8320_v24 }
 0x309   : > { %5703 = vmatmul.mubr.f32.gmra.mrb[10].mxu1 %v8455_v40 }
 0x30a   : > { %5705 = vmatprep.mubr.f32.mxu1 %v8481_v32  ;;  %6334 = vmatpush3.bf16.msra.mxu1 %v8320_v24  ;;  %v9703_v24 = vld [vmem:[#allocation68_spill] sm:$0xff]  ;;  %v9740_v32 = vld [vmem:[#allocation23_spill] sm:$0xff] }
 0x30b   : > { %6336 = vmatprep.subr.bf16.mxu1 %v8326_v1  ;;  %v9741_v40 = vand.u32 4294901760, %v9740_v32  ;;  %v9752_v32 = vld [vmem:[#allocation49_spill] sm:$0xff] }
 0x30d   : > { %5706 = vmatmul.mubr.f32.gmra.mrb[12].mxu1 %v8477_v31  ;;  %v9738_v31 = vld [vmem:[#allocation38_spill] sm:$0xff] }
 0x30e   : > { %5708 = vmatprep.mubr.f32.mxu1 %v8507_v33  ;;  %6338 = vmatpush3.bf16.msra.mxu1 %v8326_v1  ;;  %v9704_v1 = vld [vmem:[#allocation24_spill] sm:$0xff]  ;;  %v9737_v33 = vand.u32 4294901760, %v8374_v20 }
 0x30f   : > { %6340 = vmatprep.subr.bf16.mxu1 %v6339_v10 }
 0x311   : > { %5709 = vmatmul.mubr.f32.gmra.mrb[14].mxu1 %v8503_v16 }
 0x312   : > { %5711 = vmatprep.mubr.f32.mxu1 %v8528_v8  ;;  %6342 = vmatpush3.bf16.msra.mxu1 %v6339_v10  ;;  %v9713_v10 = vld [vmem:[#allocation27_spill] sm:$0xff] }
 0x313   : > { %6344 = vmatprep.subr.bf16.mxu1 %v8065_v9 }
 0x315   : > { %5712 = vmatmul.mubr.f32.gmra.mrb[16].mxu1 %v8524_v6  ;;  %v9734_v6 = vld [vmem:[#allocation37_spill] sm:$0xff] }
 0x316   : > { %5714 = vmatprep.mubr.f32.mxu1 %v8550_v0  ;;  %v9735_v8 = vand.u32 4294901760, %v9734_v6  ;;  %v9748_v6 = vand.u32 4294901760, %v9699_v52 }
 0x319   : > { %5715 = vmatmul.mubr.f32.gmra.mrb[18].mxu1 %v8546_v22  ;;  %v9732_v22 = vld [vmem:[#allocation19_spill] sm:$0xff] }
 0x31a   : > { %5717 = vmatprep.mubr.f32.mxu1 %v8571_v14  ;;  %v9731_v14 = vand.u32 4294901760, %v8349_v47  ;;  %v9733_v0 = vand.u32 4294901760, %v9732_v22 }
 0x31c   : > { %v6379_v16 = vpack.c.bf16 %v9735_v8, %v9733_v0  ;;  %v9744_v0 = vld [vmem:[#allocation43_spill] sm:$0xff]  ;;  %v9746_v8 = vld [vmem:[#allocation45_spill] sm:$0xff] }
 0x31d   : > { %5718 = vmatmul.mubr.f32.gmra.mrb[20].mxu1 %v8567_v17  ;;  %v9730_v17 = vld [vmem:[#allocation73_spill] sm:$0xff] }
 0x31e   : > { %5720 = vmatprep.mubr.f32.mxu1 %v8592_v49  ;;  %v9729_v49 = vld [vmem:[#allocation74_spill] sm:$0xff] }
 0x321   : > { %5721 = vmatmul.mubr.f32.gmra.mrb[22].mxu1 %v8588_v38  ;;  %v9724_v38 = vld [vmem:[#allocation47_spill] sm:$0xff] }
 0x322   : > { %5723 = vmatprep.mubr.f32.mxu1 %v8612_v44  ;;  %v9723_v44 = vld [vmem:[#allocation50_spill] sm:$0xff] }
 0x325   : > { %5724 = vmatmul.mubr.f32.gmra.mrb[24].mxu1 %v8608_v57  ;;  %v9722_v57 = vld [vmem:[#allocation26_spill] sm:$0xff] }
 0x326   : > { %5726 = vmatprep.mubr.f32.mxu1 %v8632_v46  ;;  %v9721_v46 = vld [vmem:[#allocation42_spill] sm:$0xff] }
 0x329   : > { %5727 = vmatmul.mubr.f32.gmra.mrb[26].mxu1 %v8628_v45  ;;  %v9720_v45 = vld [vmem:[#allocation60_spill] sm:$0xff] }
 0x32a   : > { %5729 = vmatprep.mubr.f32.mxu1 %v8652_v5  ;;  %v9719_v5 = vld [vmem:[#allocation63_spill] sm:$0xff] }
 0x32d   : > { %5730 = vmatmul.mubr.f32.gmra.mrb[28].mxu1 %v8648_v15  ;;  %v9718_v15 = vld [vmem:[#allocation40_spill] sm:$0xff] }
 0x32e   : > { %5732 = vmatprep.mubr.f32.mxu1 %v8672_v21 }
 0x331   : > { %5733 = vmatmul.mubr.f32.gmra.mrb[30].mxu1 %v8668_v4  ;;  %v9717_v4 = vand.u32 4294901760, %v9716_v62  ;;  %v9728_v62 = vld [vmem:[#allocation66_spill] sm:$0xff] }
 0x332   : > { %5767 = vmatprep.mubr.f32.mxu1 %v8349_v47  ;;  %v9742_v47 = vand.u32 4294901760, %v8367_v34 }
 0x333   : > { %v6375_v21 = vpack.c.bf16 %v9717_v4, %v9715_v12  ;;  %v9726_v12 = vld [vmem:[#allocation57_spill] sm:$0xff]  ;;  %v9727_v4 = vld [vmem:[#allocation67_spill] sm:$0xff] }
 0x335   : > { %5768 = vmatmul.mubr.f32.vlgmr.msra.gmra.mrb[0].mxu1 %v8346_v58 }
 0x336   : > { %5770 = vmatprep.mubr.f32.mxu1 %v8374_v20  ;;  %6346 = vmatpush3.bf16.msra.mxu1 %v8065_v9  ;;  %v9747_v20 = vand.u32 4294901760, %v9746_v8 }
 0x337   : > { %6348 = vmatprep.subr.bf16.mxu1 %v8072_v35 }
 0x339   : > { %5771 = vmatmul.mubr.f32.gmra.mrb[2].mxu1 %v8367_v34  ;;  %v9750_v34 = vld [vmem:[#allocation46_spill] sm:$0xff] }
 0x33a   : > { %5773 = vmatprep.mubr.f32.mxu1 %v8402_v43  ;;  %6350 = vmatpush3.bf16.msra.mxu1 %v8072_v35 }
 0x33b   : > { %6352 = vmatprep.subr.bf16.mxu1 %v9698_v28 }
 0x33d   : > { %5774 = vmatmul.mubr.f32.gmra.mrb[4].mxu1 %v9699_v52  ;;  %v9756_v52 = vld [vmem:[#allocation34_spill] sm:$0xff] }
 0x33e   : > { %5776 = vmatprep.mubr.f32.mxu1 %v9700_v36  ;;  %6354 = vmatpush3.bf16.msra.mxu1 %v9698_v28 }
 0x33f   : > { %6356 = vmatprep.subr.bf16.mxu1 %v9701_v41 }
 0x341   : > { %5777 = vmatmul.mubr.f32.gmra.mrb[6].mxu1 %v9702_v18 }
 0x342   : > { %5779 = vmatprep.mubr.f32.mxu1 %v9703_v24  ;;  %6358 = vmatpush3.bf16.msra.mxu1 %v9701_v41 }
 0x343   : > { %6360 = vmatprep.subr.bf16.mxu1 %v9704_v1 }
 0x345   : > { %5780 = vmatmul.mubr.f32.gmra.mrb[8].mxu1 %v9705_v29 }
 0x346   : > { %5782 = vmatprep.mubr.f32.mxu1 %v9706_v39  ;;  %6362 = vmatpush3.bf16.msra.mxu1 %v9704_v1 }
 0x347   : > { %6364 = vmatprep.subr.bf16.mxu1 %v9707_v42 }
 0x349   : > { %5783 = vmatmul.mubr.f32.gmra.mrb[10].mxu1 %v9708_v56 }
 0x34a   : > { %5785 = vmatprep.mubr.f32.mxu1 %v9709_v51  ;;  %6366 = vmatpush3.bf16.msra.mxu1 %v9707_v42 }
 0x34b   : > { %6368 = vmatprep.subr.bf16.mxu1 %v9710_v59 }
 0x34d   : > { %5786 = vmatmul.mubr.f32.gmra.mrb[12].mxu1 %v9711_v23 }
 0x34e   : > { %5788 = vmatprep.mubr.f32.mxu1 %v9712_v50  ;;  %6370 = vmatpush3.bf16.msra.mxu1 %v9710_v59  ;;  %v9739_v59 = vand.u32 4294901760, %v9738_v31  ;;  %v9749_v31 = vand.u32 4294901760, %v9700_v36 }
 0x34f   : > { %6372 = vmatprep.subr.bf16.mxu1 %v9713_v10 }
 0x350   : > { %v6383_v42 = vpack.c.bf16 %v9741_v40, %v9739_v59  ;;  %v9751_v40 = vand.u32 4294901760, %v9750_v34  ;;  %v9757_v59 = vand.u32 4294901760, %v9756_v52  ;;  %v9771_v34 = vand.u32 4294901760, %v9712_v50  ;;  %v9806_v52 = vld [vmem:[#allocation62_spill] sm:$0xff] }
 0x351   : > { %5789 = vmatmul.mubr.f32.gmra.mrb[14].mxu1 %v9718_v15  ;;  %v9777_v50 = vand.u32 4294901760, %v9723_v44 }
 0x352   : > { %5791 = vmatprep.mubr.f32.mxu1 %v9719_v5  ;;  %6374 = vmatpush3.bf16.msra.mxu1 %v9713_v10  ;;  %v9736_v10 = vand.u32 4294901760, %v8346_v58  ;;  %v9745_v58 = vand.u32 4294901760, %v9744_v0 }
 0x353   : > { %6376 = vmatprep.subr.bf16.mxu1 %v6375_v21 }
 0x355   : > { %5792 = vmatmul.mubr.f32.gmra.mrb[16].mxu1 %v9720_v45 }
 0x356   : > { %5794 = vmatprep.mubr.f32.mxu1 %v9721_v46 }
 0x359   : > { %5795 = vmatmul.mubr.f32.gmra.mrb[18].mxu1 %v9722_v57 }
 0x35a   : > { %5797 = vmatprep.mubr.f32.mxu1 %v9723_v44  ;;  %v9784_v44 = vand.u32 4294901760, %v9730_v17 }
 0x35d   : > { %5798 = vmatmul.mubr.f32.gmra.mrb[20].mxu1 %v9724_v38 }
 0x35e   : > { %5800 = vmatprep.mubr.f32.mxu1 %v9725_v19 }
 0x361   : > { %5801 = vmatmul.mubr.f32.gmra.mrb[22].mxu1 %v9726_v12 }
 0x362   : > { %5803 = vmatprep.mubr.f32.mxu1 %v9727_v4 }
 0x365   : > { %5804 = vmatmul.mubr.f32.gmra.mrb[24].mxu1 %v9728_v62 }
 0x366   : > { %5806 = vmatprep.mubr.f32.mxu1 %v9729_v49 }
 0x369   : > { %5807 = vmatmul.mubr.f32.gmra.mrb[26].mxu1 %v9730_v17  ;;  %v9792_v17 = vld [vmem:[#allocation25_spill] sm:$0xff] }
 0x36a   : > { %5809 = vmatprep.mubr.f32.mxu1 %v8662_v53 }
 0x36d   : > { %5810 = vmatmul.mubr.f32.gmra.mrb[28].mxu1 %v8656_v63 }
 0x36e   : > { %5812 = vmatprep.mubr.f32.mxu1 %v8682_v61 }
 0x371   : > { %5813 = vmatmul.mubr.f32.gmra.mrb[30].mxu1 %v8676_v60 }
 0x372   : > { %5847 = vmatprep.mubr.f32.mxu1 %v9731_v14  ;;  %v9743_v14 = vand.u32 4294901760, %v8402_v43  ;;  %v9753_v43 = vand.u32 4294901760, %v9752_v32  ;;  %v9801_v32 = vld [vmem:[#allocation31_spill] sm:$0xff] }
 0x374   : > { %v6391_v22 = vpack.c.bf16 %v9753_v43, %v9751_v40  ;;  %v9780_v40 = vand.u32 4294901760, %v9726_v12  ;;  %v9787_v12 = vand.u32 4294901760, %v8682_v61  ;;  %v9791_v61 = vld [vmem:[#allocation29_spill] sm:$0xff]  ;;  %v9802_v43 = vld [vmem:[#allocation44_spill] sm:$0xff] }
 0x375   : > { %5848 = vmatmul.mubr.f32.vlgmr.msra.gmra.mrb[0].mxu1 %v9736_v10  ;;  %v9758_v10 = vld [vmem:[#allocation18_spill] sm:$0xff] }
 0x376   : > { %5850 = vmatprep.mubr.f32.mxu1 %v9737_v33  ;;  %6378 = vmatpush3.bf16.msra.mxu1 %v6375_v21  ;;  %v6387_v33 = vpack.c.bf16 %v9747_v20, %v9745_v58  ;;  %v9755_v21 = vand.u32 4294901760, %v9703_v24  ;;  %v9759_v36 = vand.u32 4294901760, %v9758_v10  ;;  %v9764_v58 = vld [vmem:[#allocation36_spill] sm:$0xff]  ;;  %v9766_v20 = vand.u32 4294901760, %v9708_v56  ;;  %v9808_v10 = vld [vmem:[#allocation71_spill] sm:$0xff] }
 0x377   : > { %6380 = vmatprep.subr.bf16.mxu1 %v6379_v16  ;;  %v9765_v24 = vand.u32 4294901760, %v9764_v58  ;;  %v9772_v56 = vand.u32 4294901760, %v9718_v15  ;;  %v9778_v15 = vand.u32 4294901760, %v9724_v38  ;;  %v9785_v38 = vand.u32 4294901760, %v8662_v53  ;;  %v9794_v53 = vld [vmem:[#allocation39_spill] sm:$0xff] }
 0x379   : > { %5851 = vmatmul.mubr.f32.gmra.mrb[2].mxu1 %v9742_v47  ;;  %v6395_v47 = vpack.c.bf16 %v9759_v36, %v9757_v59  ;;  %v9807_v59 = vld [vmem:[#allocation72_spill] sm:$0xff] }
 0x37a   : > { %5853 = vmatprep.mubr.f32.mxu1 %v9743_v14  ;;  %6382 = vmatpush3.bf16.msra.mxu1 %v6379_v16  ;;  %v9754_v16 = vand.u32 4294901760, %v9702_v18  ;;  %v9761_v14 = vand.u32 4294901760, %v9706_v39  ;;  %v9762_v18 = vld [vmem:[#allocation35_spill] sm:$0xff]  ;;  %v9769_v39 = vand.u32 4294901760, %v8254_v2  ;;  %v9775_v2 = vand.u32 4294901760, %v9721_v46  ;;  %v9809_v36 = vld [vmem:[#allocation76_spill] sm:$0xff] }
 0x37b   : > { %6384 = vmatprep.subr.bf16.mxu1 %v6383_v42  ;;  %v9763_v0 = vand.u32 4294901760, %v9762_v18  ;;  %v9782_v46 = vand.u32 4294901760, %v9728_v62  ;;  %v9800_v62 = vld [vmem:[#allocation64_spill] sm:$0xff] }
 0x37d   : > { %5854 = vmatmul.mubr.f32.gmra.mrb[4].mxu1 %v9748_v6  ;;  %v6399_v8 = vpack.c.bf16 %v9765_v24, %v9763_v0 }
 0x37e   : > { %5856 = vmatprep.mubr.f32.mxu1 %v9749_v31  ;;  %6386 = vmatpush3.bf16.msra.mxu1 %v6383_v42  ;;  %v9760_v42 = vand.u32 4294901760, %v9705_v29  ;;  %v9768_v29 = vand.u32 4294901760, %v8252_v27  ;;  %v9770_v31 = vand.u32 4294901760, %v9711_v23  ;;  %v9774_v27 = vand.u32 4294901760, %v9720_v45 }
 0x37f   : > { %6388 = vmatprep.subr.bf16.mxu1 %v6387_v33  ;;  %v9776_v23 = vand.u32 4294901760, %v9722_v57  ;;  %v9781_v45 = vand.u32 4294901760, %v9727_v4  ;;  %v9783_v57 = vand.u32 4294901760, %v9729_v49  ;;  %v9788_v4 = vand.u32 4294901760, %v8676_v60  ;;  %v9793_v49 = vld [vmem:[#allocation22_spill] sm:$0xff]  ;;  %v9795_v60 = vld [vmem:[#allocation27_spill] sm:$0xff] }
 0x380   : > { %v6403_v6 = vpack.c.bf16 %v9769_v39, %v9768_v29 }
 0x381   : > { %5857 = vmatmul.mubr.f32.gmra.mrb[6].mxu1 %v9754_v16  ;;  %v9804_v16 = vld [vmem:[#allocation52_spill] sm:$0xff] }
 0x382   : > { %5859 = vmatprep.mubr.f32.mxu1 %v9755_v21  ;;  %6390 = vmatpush3.bf16.msra.mxu1 %v6387_v33  ;;  %v9767_v33 = vand.u32 4294901760, %v9709_v51  ;;  %v9773_v51 = vand.u32 4294901760, %v9719_v5  ;;  %v9779_v5 = vand.u32 4294901760, %v9725_v19  ;;  %v9786_v19 = vand.u32 4294901760, %v8656_v63  ;;  %v9796_v63 = vld [vmem:[#allocation33_spill] sm:$0xff] }
 0x383   : > { %6392 = vmatprep.subr.bf16.mxu1 %v6391_v22  ;;  %v9805_v21 = vld [vmem:[#allocation65_spill] sm:$0xff] }
 0x385   : > { %5860 = vmatmul.mubr.f32.gmra.mrb[8].mxu1 %v9760_v42  ;;  %v9811_v42 = vld [vmem:[#allocation78_spill] sm:$0xff] }
 0x386   : > { %5862 = vmatprep.mubr.f32.mxu1 %v9761_v14  ;;  %6394 = vmatpush3.bf16.msra.mxu1 %v6391_v22  ;;  %v9803_v22 = vld [vmem:[#allocation53_spill] sm:$0xff] }
 0x387   : > { %6396 = vmatprep.subr.bf16.mxu1 %v6395_v47  ;;  %v9812_v14 = vld [vmem:[#allocation77_spill] sm:$0xff] }
 0x389   : > { %5863 = vmatmul.mubr.f32.gmra.mrb[10].mxu1 %v9766_v20 }
 0x38a   : > { %5865 = vmatprep.mubr.f32.mxu1 %v9767_v33  ;;  %6398 = vmatpush3.bf16.msra.mxu1 %v6395_v47  ;;  %v9810_v47 = vld [vmem:[#allocation75_spill] sm:$0xff] }
 0x38b   : > { %6400 = vmatprep.subr.bf16.mxu1 %v6399_v8 }
 0x38d   : > { %5866 = vmatmul.mubr.f32.gmra.mrb[12].mxu1 %v9770_v31 }
 0x38e   : > { %5868 = vmatprep.mubr.f32.mxu1 %v9771_v34  ;;  %6402 = vmatpush3.bf16.msra.mxu1 %v6399_v8 }
 0x38f   : > { %6404 = vmatprep.subr.bf16.mxu1 %v6403_v6 }
 0x391   : > { %5869 = vmatmul.mubr.f32.gmra.mrb[14].mxu1 %v9772_v56 }
 0x392   : > { %5871 = vmatprep.mubr.f32.mxu1 %v9773_v51  ;;  %6406 = vmatpush3.bf16.msra.mxu1 %v6403_v6 }
 0x393   : > { %6408 = vmatprep.subr.bf16.mxu1 %v8065_v9 }
 0x395   : > { %5872 = vmatmul.mubr.f32.gmra.mrb[16].mxu1 %v9774_v27 }
 0x396   : > { %5874 = vmatprep.mubr.f32.mxu1 %v9775_v2 }
 0x399   : > { %5875 = vmatmul.mubr.f32.gmra.mrb[18].mxu1 %v9776_v23 }
 0x39a   : > { %5877 = vmatprep.mubr.f32.mxu1 %v9777_v50 }
 0x39d   : > { %5878 = vmatmul.mubr.f32.gmra.mrb[20].mxu1 %v9778_v15 }
 0x39e   : > { %5880 = vmatprep.mubr.f32.mxu1 %v9779_v5 }
 0x3a1   : > { %5881 = vmatmul.mubr.f32.gmra.mrb[22].mxu1 %v9780_v40 }
 0x3a2   : > { %5883 = vmatprep.mubr.f32.mxu1 %v9781_v45 }
 0x3a5   : > { %5884 = vmatmul.mubr.f32.gmra.mrb[24].mxu1 %v9782_v46 }
 0x3a6   : > { %5886 = vmatprep.mubr.f32.mxu1 %v9783_v57 }
 0x3a9   : > { %5887 = vmatmul.mubr.f32.gmra.mrb[26].mxu1 %v9784_v44 }
 0x3aa   : > { %5889 = vmatprep.mubr.f32.mxu1 %v9785_v38 }
 0x3ad   : > { %5890 = vmatmul.mubr.f32.gmra.mrb[28].mxu1 %v9786_v19 }
 0x3ae   : > { %5892 = vmatprep.mubr.f32.mxu1 %v9787_v12 }
 0x3b1   : > { %5893 = vmatmul.mubr.f32.gmra.mrb[30].mxu1 %v9788_v4 }
 0x3b2   : > { %5927 = vmatprep.mubr.f32.mxu1 %v8343_v48 }
 0x3b5   : > { %5928 = vmatmul.mubr.f32.vlgmr.msra.gmra.mrb[0].mxu1 %v8340_v11 }
 0x3b6   : > { %5930 = vmatprep.mubr.f32.mxu1 %v8362_v13  ;;  %6410 = vmatpush3.bf16.msra.mxu1 %v8065_v9  ;;  %v9789_v9 = vld [vmem:[#allocation15_spill] sm:$0xff] }
 0x3b7   : > { %6412 = vmatprep.subr.bf16.mxu1 %v8072_v35 }
 0x3b9   : > { %5931 = vmatmul.mubr.f32.gmra.mrb[2].mxu1 %v8358_v26 }
 0x3ba   : > { %5933 = vmatprep.mubr.f32.mxu1 %v8386_v25  ;;  %6414 = vmatpush3.bf16.msra.mxu1 %v8072_v35  ;;  %v9790_v35 = vld [vmem:[#allocation69_spill] sm:$0xff] }
 0x3bb   : > { %6416 = vmatprep.subr.bf16.mxu1 %v9698_v28 }
 0x3bd   : > { %5934 = vmatmul.mubr.f32.gmra.mrb[4].mxu1 %v8380_v30 }
 0x3be   : > { %5936 = vmatprep.mubr.f32.mxu1 %v8418_v54  ;;  %6418 = vmatpush3.bf16.msra.mxu1 %v9698_v28  ;;  %v9797_v28 = vld [vmem:[#allocation58_spill] sm:$0xff] }
 0x3bf   : > { %6420 = vmatprep.subr.bf16.mxu1 %v9701_v41 }
 0x3c1   : > { %5937 = vmatmul.mubr.f32.gmra.mrb[6].mxu1 %v8408_v3 }
 0x3c2   : > { %5939 = vmatprep.mubr.f32.mxu1 %v8439_v55  ;;  %6422 = vmatpush3.bf16.msra.mxu1 %v9701_v41  ;;  %v9798_v41 = vld [vmem:[#allocation51_spill] sm:$0xff] }
 0x3c3   : > { %6424 = vmatprep.subr.bf16.mxu1 %v9704_v1 }
 0x3c5   : > { %5940 = vmatmul.mubr.f32.gmra.mrb[8].mxu1 %v8435_v37 }
 0x3c6   : > { %5942 = vmatprep.mubr.f32.mxu1 %v8459_v7  ;;  %6426 = vmatpush3.bf16.msra.mxu1 %v9704_v1  ;;  %v9799_v1 = vld [vmem:[#allocation41_spill] sm:$0xff] }
 0x3c7   : > { %6428 = vmatprep.subr.bf16.mxu1 %v9789_v9 }
 0x3c9   : > { %5943 = vmatmul.mubr.f32.gmra.mrb[10].mxu1 %v9790_v35 }
 0x3ca   : > { %5945 = vmatprep.mubr.f32.mxu1 %v9791_v61  ;;  %6430 = vmatpush3.bf16.msra.mxu1 %v9789_v9 }
 0x3cb   : > { %6432 = vmatprep.subr.bf16.mxu1 %v9792_v17 }
 0x3cd   : > { %5946 = vmatmul.mubr.f32.gmra.mrb[12].mxu1 %v9793_v49 }
 0x3ce   : > { %5948 = vmatprep.mubr.f32.mxu1 %v9794_v53  ;;  %6434 = vmatpush3.bf16.msra.mxu1 %v9792_v17 }
 0x3cf   : > { %6436 = vmatprep.subr.bf16.mxu1 %v9795_v60 }
 0x3d1   : > { %5949 = vmatmul.mubr.f32.gmra.mrb[14].mxu1 %v9796_v63 }
 0x3d2   : > { %5951 = vmatprep.mubr.f32.mxu1 %v9797_v28  ;;  %6438 = vmatpush3.bf16.msra.mxu1 %v9795_v60 }
 0x3d5   : > { %5952 = vmatmul.mubr.f32.gmra.mrb[16].mxu1 %v9798_v41 }
 0x3d6   : > { %5954 = vmatprep.mubr.f32.mxu1 %v9799_v1 }
 0x3d9   : > { %5955 = vmatmul.mubr.f32.gmra.mrb[18].mxu1 %v9800_v62 }
 0x3da   : > { %5957 = vmatprep.mubr.f32.mxu1 %v9801_v32 }
 0x3dd   : > { %5958 = vmatmul.mubr.f32.gmra.mrb[20].mxu1 %v9802_v43 }
 0x3de   : > { %5960 = vmatprep.mubr.f32.mxu1 %v9803_v22 }
 0x3e1   : > { %5961 = vmatmul.mubr.f32.gmra.mrb[22].mxu1 %v9804_v16 }
 0x3e2   : > { %5963 = vmatprep.mubr.f32.mxu1 %v9805_v21 }
 0x3e5   : > { %5964 = vmatmul.mubr.f32.gmra.mrb[24].mxu1 %v9806_v52 }
 0x3e6   : > { %5966 = vmatprep.mubr.f32.mxu1 %v9807_v59 }
 0x3e9   : > { %5967 = vmatmul.mubr.f32.gmra.mrb[26].mxu1 %v9808_v10 }
 0x3ea   : > { %5969 = vmatprep.mubr.f32.mxu1 %v9809_v36 }
 0x3ed   : > { %5970 = vmatmul.mubr.f32.gmra.mrb[28].mxu1 %v9810_v47 }
 0x3ee   : > { %5972 = vmatprep.mubr.f32.mxu1 %v9811_v42 }
 0x3f1   : > { %5973 = vmatmul.mubr.f32.gmra.mrb[30].mxu1 %v9812_v14 }
 0x3f2   : > { %6007 = vmatprep.mubr.f32.mxu1 %v8343_v48 }
 0x3f5   : > { %6008 = vmatmul.mubr.f32.vlgmr.msra.gmra.mrb[0].mxu1 %v8340_v11 }
 0x3f6   : > { %6010 = vmatprep.mubr.f32.mxu1 %v8362_v13 }
 0x3f9   : > { %6011 = vmatmul.mubr.f32.gmra.mrb[2].mxu1 %v8358_v26 }
 0x3fa   : > { %6013 = vmatprep.mubr.f32.mxu1 %v8386_v25 }
 0x3fd   : > { %6014 = vmatmul.mubr.f32.gmra.mrb[4].mxu1 %v8380_v30 }
 0x3fe   : > { %6016 = vmatprep.mubr.f32.mxu1 %v8418_v54 }
 0x401   : > { %6017 = vmatmul.mubr.f32.gmra.mrb[6].mxu1 %v8408_v3 }
 0x402   : > { %6019 = vmatprep.mubr.f32.mxu1 %v8439_v55 }
 0x405   : > { %6020 = vmatmul.mubr.f32.gmra.mrb[8].mxu1 %v8435_v37 }
 0x406   : > { %6022 = vmatprep.mubr.f32.mxu1 %v8459_v7 }
 0x409   : > { %6023 = vmatmul.mubr.f32.gmra.mrb[10].mxu1 %v9790_v35 }
 0x40a   : > { %6025 = vmatprep.mubr.f32.mxu1 %v9791_v61 }
 0x40d   : > { %6026 = vmatmul.mubr.f32.gmra.mrb[12].mxu1 %v9793_v49 }
 0x40e   : > { %6028 = vmatprep.mubr.f32.mxu1 %v9794_v53 }
 0x411   : > { %6029 = vmatmul.mubr.f32.gmra.mrb[14].mxu1 %v9796_v63 }
 0x412   : > { %6031 = vmatprep.mubr.f32.mxu1 %v9797_v28 }
 0x415   : > { %6032 = vmatmul.mubr.f32.gmra.mrb[16].mxu1 %v9798_v41 }
 0x416   : > { %6034 = vmatprep.mubr.f32.mxu1 %v9799_v1 }
 0x419   : > { %6035 = vmatmul.mubr.f32.gmra.mrb[18].mxu1 %v9800_v62 }
 0x41a   : > { %6037 = vmatprep.mubr.f32.mxu1 %v9801_v32 }
 0x41d   : > { %6038 = vmatmul.mubr.f32.gmra.mrb[20].mxu1 %v9802_v43 }
 0x41e   : > { %6040 = vmatprep.mubr.f32.mxu1 %v9803_v22 }
 0x421   : > { %6041 = vmatmul.mubr.f32.gmra.mrb[22].mxu1 %v9804_v16 }
 0x422   : > { %6043 = vmatprep.mubr.f32.mxu1 %v9805_v21 }
 0x425   : > { %6044 = vmatmul.mubr.f32.gmra.mrb[24].mxu1 %v9806_v52 }
 0x426   : > { %6046 = vmatprep.mubr.f32.mxu1 %v9807_v59 }
 0x429   : > { %6047 = vmatmul.mubr.f32.gmra.mrb[26].mxu1 %v9808_v10 }
 0x42a   : > { %6049 = vmatprep.mubr.f32.mxu1 %v9809_v36 }
 0x42d   : > { %6050 = vmatmul.mubr.f32.gmra.mrb[28].mxu1 %v9810_v47 }
 0x42e   : > { %6052 = vmatprep.mubr.f32.mxu1 %v9811_v42 }
 0x431   : > { %6053 = vmatmul.mubr.f32.gmra.mrb[30].mxu1 %v9812_v14 }
 0x432   : > { %6934 = shalt.err (!%p6931_p1)
}
 0x433   : > { %s6935_s5 = scalar_lea.hbm %s8973_s6, 4096  ;;  %s6939_s24 = scalar_lea.hbm %s9097_s3, 8192 }
 0x434   : > { %p6936_p13 = scmp.ne.s32.totalorder %s8973_s6, %s6935_s5  ;;  %p6940_p4 = scmp.lt.u32.totalorder %s8973_s6, %s9097_s3 }
 0x435   : > { %p6941_p5 = scmp.lt.u32.totalorder %s6939_s24, %s6935_s5  ;;  %p6943_p11 = scmp.lt.u32.totalorder %s6935_s5, %s8973_s6 }
 0x436   : > { %p6937_p6 = pnand %p6936_p13, %p9813_p0 }
 0x437   : > { %p6942_p8 = por %p6941_p5, %p6940_p4 }
 0x438   : > { %p6938_p10 = pneg %p6937_p6 }
 0x439   : > { %p6944_p2 = por %p6943_p11, %p6942_p8 }
 0x43b   : > { %p6945_p3 = pnand %p6944_p2, %p6938_p10 }
 0x43d   : > { %6948 = shalt.err (!%p6945_p3)
}
 0x43e   : > { %s7031_s30 = smov 128   ;;  %s7032_s28 = smov 8  }
 0x43f   : > { %6769 = dma.vmem_to_hbm [thread:$0]  (%p9813_p0), %s8975_s11, 4096, %s8973_s6, %s4336_s7, %s7031_s30, %s7031_s30, %s7032_s28  }
 0x440   : > { %s9005_s27 = scalar_lea.vmem [#allocation9], %s7243_s10  ;;  %s9043_s7 = scalar_lea.hbm %s9098_s4, %s4517_s23 }
 0x441   : > { %s4370_s10 = sshll.u32 %s9005_s27, 4  ;;  %s4341_s20 = scalar_lea.sflag [#allocation10], %s7240_s8  ;;  %s9045_s10 = int_to_ptr.vmem [resolvable:$true] %s4370_s10 }
 0x442   : > { %s6949_s29 = scalar_lea.vmem %s9045_s10, 4096  ;;  %s7033_s19 = smov [#allocation9]  }
 0x443   : > { %p6950_p7 = scmp.ne.s32.totalorder %s9045_s10, %s6949_s29  ;;  %s6953_s5 = sshll.u32 %s7033_s19, 4  ;;  %s6954_s5 = int_to_ptr.vmem [resolvable:$false] %s6953_s5 }
 0x444   : > { %s6955_s9 = scalar_lea.vmem %s6954_s5, 8192  ;;  %p6956_p1 = scmp.lt.s32.totalorder %s9045_s10, %s6954_s5 }
 0x445   : > { %p6951_p9 = pnand %p6950_p7, %p9813_p0  ;;  %p6957_p13 = scmp.lt.s32.totalorder %s6955_s9, %s6949_s29 }
 0x447   : > { %p6952_p12 = pneg %p6951_p9  ;;  %p6958_p6 = por %p6957_p13, %p6956_p1 }
 0x449   : > { %p6959_p10 = pnand %p6958_p6, %p6952_p12 }
 0x4c8   : > { %v6009_v54 = vpop.f32.mrb[0].mxu1 }
 0x4c9   : > { %4304 = vst [vmem:[%s9005_s27 + $0x8] sm:$0xff] %v6009_v54  ;;  %v4113_v11 = vpop.f32.mrb[1].mxu1 }
 0x4ca   : > { %4303 = vst [vmem:[%s9005_s27] sm:$0xff] %v4113_v11 }
 0x4cc   : > { %v6012_v48 = vpop.f32.mrb[2].mxu1 }
 0x4cd   : > { %4306 = vst [vmem:[%s9005_s27 + $0x18] sm:$0xff] %v6012_v48  ;;  %v4125_v26 = vpop.f32.mrb[3].mxu1 }
 0x4ce   : > { %4305 = vst [vmem:[%s9005_s27 + $0x10] sm:$0xff] %v4125_v26 }
 0x4d0   : > { %v6015_v13 = vpop.f32.mrb[4].mxu1 }
 0x4d1   : > { %4308 = vst [vmem:[%s9005_s27 + $0x28] sm:$0xff] %v6015_v13  ;;  %v4137_v30 = vpop.f32.mrb[5].mxu1 }
 0x4d2   : > { %4307 = vst [vmem:[%s9005_s27 + $0x20] sm:$0xff] %v4137_v30 }
 0x4d4   : > { %v6018_v25 = vpop.f32.mrb[6].mxu1 }
 0x4d5   : > { %4310 = vst [vmem:[%s9005_s27 + $0x38] sm:$0xff] %v6018_v25  ;;  %v4149_v3 = vpop.f32.mrb[7].mxu1 }
 0x4d6   : > { %4309 = vst [vmem:[%s9005_s27 + $0x30] sm:$0xff] %v4149_v3 }
 0x4d8   : > { %v6021_v37 = vpop.f32.mrb[8].mxu1 }
 0x4d9   : > { %4312 = vst [vmem:[%s9005_s27 + $0x48] sm:$0xff] %v6021_v37  ;;  %v4161_v55 = vpop.f32.mrb[9].mxu1 }
 0x4da   : > { %4311 = vst [vmem:[%s9005_s27 + $0x40] sm:$0xff] %v4161_v55 }
 0x4dc   : > { %v6024_v7 = vpop.f32.mrb[10].mxu1 }
 0x4dd   : > { %4314 = vst [vmem:[%s9005_s27 + $0x58] sm:$0xff] %v6024_v7  ;;  %v4173_v18 = vpop.f32.mrb[11].mxu1 }
 0x4de   : > { %4313 = vst [vmem:[%s9005_s27 + $0x50] sm:$0xff] %v4173_v18 }
 0x4e0   : > { %v6027_v0 = vpop.f32.mrb[12].mxu1 }
 0x4e1   : > { %4316 = vst [vmem:[%s9005_s27 + $0x68] sm:$0xff] %v6027_v0  ;;  %v4185_v58 = vpop.f32.mrb[13].mxu1 }
 0x4e2   : > { %4315 = vst [vmem:[%s9005_s27 + $0x60] sm:$0xff] %v4185_v58 }
 0x4e4   : > { %v6030_v24 = vpop.f32.mrb[14].mxu1 }
 0x4e5   : > { %4318 = vst [vmem:[%s9005_s27 + $0x78] sm:$0xff] %v6030_v24  ;;  %v4197_v8 = vpop.f32.mrb[15].mxu1 }
 0x4e6   : > { %4317 = vst [vmem:[%s9005_s27 + $0x70] sm:$0xff] %v4197_v8 }
 0x4e8   : > { %v6033_v20 = vpop.f32.mrb[16].mxu1 }
 0x4e9   : > { %4320 = vst [vmem:[%s9005_s27 + $0x88] sm:$0xff] %v6033_v20  ;;  %v4209_v33 = vpop.f32.mrb[17].mxu1 }
 0x4ea   : > { %4319 = vst [vmem:[%s9005_s27 + $0x80] sm:$0xff] %v4209_v33 }
 0x4ec   : > { %v6036_v29 = vpop.f32.mrb[18].mxu1 }
 0x4ed   : > { %4322 = vst [vmem:[%s9005_s27 + $0x98] sm:$0xff] %v6036_v29  ;;  %v4221_v39 = vpop.f32.mrb[19].mxu1 }
 0x4ee   : > { %4321 = vst [vmem:[%s9005_s27 + $0x90] sm:$0xff] %v4221_v39 }
 0x4f0   : > { %v6039_v6 = vpop.f32.mrb[20].mxu1 }
 0x4f1   : > { %4324 = vst [vmem:[%s9005_s27 + $0xa8] sm:$0xff] %v6039_v6  ;;  %v4233_v31 = vpop.f32.mrb[21].mxu1 }
 0x4f2   : > { %4323 = vst [vmem:[%s9005_s27 + $0xa0] sm:$0xff] %v4233_v31 }
 0x4f4   : > { %v6042_v34 = vpop.f32.mrb[22].mxu1 }
 0x4f5   : > { %4326 = vst [vmem:[%s9005_s27 + $0xb8] sm:$0xff] %v6042_v34  ;;  %v4245_v56 = vpop.f32.mrb[23].mxu1 }
 0x4f6   : > { %4325 = vst [vmem:[%s9005_s27 + $0xb0] sm:$0xff] %v4245_v56 }
 0x4f8   : > { %v6045_v51 = vpop.f32.mrb[24].mxu1 }
 0x4f9   : > { %4328 = vst [vmem:[%s9005_s27 + $0xc8] sm:$0xff] %v6045_v51  ;;  %v4257_v27 = vpop.f32.mrb[25].mxu1 }
 0x4fa   : > { %4327 = vst [vmem:[%s9005_s27 + $0xc0] sm:$0xff] %v4257_v27 }
 0x4fc   : > { %v6048_v2 = vpop.f32.mrb[26].mxu1 }
 0x4fd   : > { %4330 = vst [vmem:[%s9005_s27 + $0xd8] sm:$0xff] %v6048_v2  ;;  %v4269_v23 = vpop.f32.mrb[27].mxu1 }
 0x4fe   : > { %4329 = vst [vmem:[%s9005_s27 + $0xd0] sm:$0xff] %v4269_v23 }
 0x500   : > { %v6051_v50 = vpop.f32.mrb[28].mxu1 }
 0x501   : > { %4332 = vst [vmem:[%s9005_s27 + $0xe8] sm:$0xff] %v6051_v50  ;;  %v4281_v15 = vpop.f32.mrb[29].mxu1 }
 0x502   : > { %4331 = vst [vmem:[%s9005_s27 + $0xe0] sm:$0xff] %v4281_v15 }
 0x504   : > { %v6054_v5 = vpop.f32.mrb[30].mxu1 }
 0x505   : > { %4334 = vst [vmem:[%s9005_s27 + $0xf8] sm:$0xff] %v6054_v5  ;;  %v4293_v40 = vpop.f32.mrb[31].mxu1 }
 0x506   : > { %4333 = vst [vmem:[%s9005_s27 + $0xf0] sm:$0xff] %v4293_v40 }
 0x507   : > { %6962 = shalt.err (!%p6959_p10)
}
 0x508   : > { %s6963_s23 = scalar_lea.hbm %s9043_s7, 4096  ;;  %s6967_s21 = scalar_lea.hbm %s9098_s4, 8192 }
 0x509   : > { %p6964_p4 = scmp.ne.s32.totalorder %s9043_s7, %s6963_s23  ;;  %p6968_p11 = scmp.lt.u32.totalorder %s9043_s7, %s9098_s4 }
 0x50a   : > { %p6969_p2 = scmp.lt.u32.totalorder %s6967_s21, %s6963_s23  ;;  %p6971_p7 = scmp.lt.u32.totalorder %s6963_s23, %s9043_s7 }
 0x50b   : > { %p6965_p5 = pnand %p6964_p4, %p9813_p0 }
 0x50c   : > { %p6970_p3 = por %p6969_p2, %p6968_p11 }
 0x50d   : > { %p6966_p8 = pneg %p6965_p5 }
 0x50e   : > { %p6972_p9 = por %p6971_p7, %p6970_p3 }
 0x510   : > { %p6973_p12 = pnand %p6972_p9, %p6966_p8 }
 0x512   : > { %6976 = shalt.err (!%p6973_p12)
}
 0x513   : > { %6770 = dma.vmem_to_hbm [thread:$0]  (%p9813_p0), %s9045_s10, 4096, %s9043_s7, %s4341_s20, %s7031_s30, %s7031_s30, %s7032_s28  }
 0x514 PF: > { %s4385_s11 = sand.u32 1, %s7011_s15   ;;  %p9814_p1 = scmp.ne.s32.totalorder %s9411_s22, 0 }
 0x515   : > { %p9815_p13 = scmp.ge.s32.totalorder %s7023_s18, 2  ;;  %s4386_s6 = scalar_lea.sflag [#allocation4], %s4385_s11 }
 0x517   : > { %p6785_p6 = pnand %p9815_p13, %p9814_p1 }
 0x519   : > { %7002 = dma.done.wait (!%p6785_p6), %s4386_s6, 4096  }
 0x51a   : > { %7004 = vsyncadd (!%p6785_p6), %s4386_s6, 4294963200  ;;  %s4395_s13 = scalar_lea.sflag [#allocation10], %s4385_s11 }
 0x51b   : > { %7006 = dma.done.wait (!%p6785_p6), %s4395_s13, 4096  }
 0x51c   : > { %7008 = vsyncadd (!%p6785_p6), %s4395_s13, 4294963200  ;;  %p22_p0 = scmp.ge.s32.totalorder %s7175_s26, 4   ;;  %s9816_s15 = smov %s7015_s16 }
 0x51d   : > { %s9817_s16 = smov %s7019_s17  ;;  %s9818_s17 = smov %s7191_s14 }
 0x51e   : > { %s9819_s18 = smov %s7175_s26  ;;  %24 = sbr.rel (!%p22_p0) target bundleno = 8 (0x8), region = 102 }
 0x525   :  { %4400 = vsyncpa [#allocation3], 1 }
 0x526   :  { %4402 = vsyncpa [#allocation3 + $0x1], 1 }
 0x527   :  { %4403 = vsyncpa [#allocation6], 1 }
 0x528   :  { %4404 = vsyncpa [#allocation4], 1 }
 0x529   :  { %4406 = vsyncpa [#allocation4 + $0x1], 1 }
 0x52a   :  { %4407 = vsyncpa [#allocation10], 1 }
 0x52b   :  { %4409 = vsyncpa [#allocation10 + $0x1], 1 }

</bundles_post_ra>
